<compile_context>
chip_gen: v7x
topology: tpu7x:2x2x1
jax: 0.10.0
libtpu: 0.0.40
codegen_flags: <defaults>
</compile_context>

<pallas_src>
import jax
import jax.numpy as jnp
from jax import lax
from jax.experimental import pallas as pl
from jax.experimental.pallas import tpu as pltpu


def reward_mlp_kernel(s_ref, a_ref, w1s_ref, w1a_ref, b1_ref, w2_ref, b2_ref,
                      w3t_ref, b3_ref, out_ref):
    # fc_1: two narrow bf16 matmuls (f32 accumulation) replace
    # concat((states, actions), -1) @ w1 -- no lane-axis concatenate.
    h = (jnp.dot(s_ref[...], w1s_ref[...], preferred_element_type=jnp.float32)
         + jnp.dot(a_ref[...], w1a_ref[...], preferred_element_type=jnp.float32)
         + b1_ref[...])
    h = jnp.maximum(h, 0.0)

    # fc_2 + relu.  w2 rides bf16 in HBM (half the traffic); upcast in-kernel
    # so the matmul is exact f32 on the bf16-rounded values (tile is tiny).
    h = (jnp.dot(h, w2_ref[...].astype(jnp.float32),
                 preferred_element_type=jnp.float32) + b2_ref[...])
    h = jnp.maximum(h, 0.0)

    # fc_3: an (H, 1) MXU matmul wastes ~99% of the systolic array; do a VPU
    # multiply + cross-lane reduction instead, scalar bias from SMEM.
    r = jnp.sum(h * w3t_ref[...], axis=-1) + b3_ref[0]          # (tb,)

    # Lane-dense store into the (1, tb) output block (unmasked vst).
    out_ref[0, :] = r.astype(out_ref.dtype)


def _pick_batch_tile(B):
    # Fewer, fatter steps: single block up to 2048 rows; otherwise the largest
    # 128-multiple tile (<= 2048) that divides B; odd batches stay one block.
    if B <= 2048:
        return B
    for cand in (2048, 1024, 512, 256, 128):
        if B % cand == 0:
            return cand
    return B


def reward_model_forward(states, actions, params, *, batch_tile=None):
    B, S = states.shape
    Ba, A = actions.shape
    assert B == Ba
    w1, b1, w2, b2, w3, b3 = params
    H = w1.shape[1]

    # Pre-split fc1 weight (kills the in-kernel concat); fc3 weight as a (1,H)
    # row for the VPU reduction; scalar fc3 bias in SMEM.  Dominant streams
    # (activations, w1, w2) go bf16; biases / w3 stay f32 (tiny).
    w1_s = w1[:S, :].astype(jnp.bfloat16)
    w1_a = w1[S:, :].astype(jnp.bfloat16)
    w2_bf = w2.astype(jnp.bfloat16)
    w3t = w3.T.astype(jnp.float32)               # (1, H)
    b1 = b1.astype(jnp.float32)
    b2 = b2.astype(jnp.float32)
    b3 = b3.reshape((1,)).astype(jnp.float32)
    states_bf = states.astype(jnp.bfloat16)
    actions_bf = actions.astype(jnp.bfloat16)

    if batch_tile is None:
        batch_tile = _pick_batch_tile(B)
    tb = batch_tile
    assert B % tb == 0
    assert tb == B or tb % 128 == 0, "batch_tile must be 128-aligned or the full batch"
    grid = (B // tb,)

    flops = 2 * B * ((S + A) * H + H * H + H)
    bytes_accessed = (2 * B * (S + A)                 # bf16 activations
                      + 2 * ((S + A) * H + H * H)     # bf16 weights
                      + 4 * (3 * H + 1)               # f32 biases + w3
                      + 4 * B)                        # f32 output

    # VMEM guardrail: never below the 32 MiB default, never above v7x's 64 MiB
    # physical; scales with double-buffered blocks if H / tb ever grow.
    block_bytes = 2 * (tb * (S + A) * 2 + (S + A) * H * 2 + H * H * 2
                       + 3 * H * 4 + tb * 4)
    vmem_limit = int(min(max(2 * block_bytes + (1 << 20), 32 << 20), 64 << 20))

    out = pl.pallas_call(
        reward_mlp_kernel,
        out_shape=jax.ShapeDtypeStruct((1, B), jnp.float32),
        grid_spec=pltpu.PrefetchScalarGridSpec(
            num_scalar_prefetch=0,
            grid=grid,
            in_specs=[
                pl.BlockSpec((tb, S), lambda i: (i, 0)),            # states
                pl.BlockSpec((tb, A), lambda i: (i, 0)),            # actions
                pl.BlockSpec((S, H), lambda i: (0, 0)),             # w1_s
                pl.BlockSpec((A, H), lambda i: (0, 0)),             # w1_a
                pl.BlockSpec((1, H), lambda i: (0, 0)),             # b1
                pl.BlockSpec((H, H), lambda i: (0, 0)),             # w2
                pl.BlockSpec((1, H), lambda i: (0, 0)),             # b2
                pl.BlockSpec((1, H), lambda i: (0, 0)),             # w3^T
                pl.BlockSpec(memory_space=pltpu.MemorySpace.SMEM),  # b3 scalar
            ],
            out_specs=pl.BlockSpec((1, tb), lambda i: (0, i)),      # lane-dense
        ),
        compiler_params=pltpu.CompilerParams(
            dimension_semantics=("arbitrary",),
            vmem_limit_bytes=vmem_limit),
        cost_estimate=pl.CostEstimate(
            flops=flops, transcendentals=0, bytes_accessed=bytes_accessed),
    )(states_bf, actions_bf, w1_s, w1_a, b1, w2_bf, b2, w3t, b3)

    # PyTorch: self.fc_3(reward).squeeze(dim=1) -> shape (B,)
    return out.reshape(B)


def init_params(key, in_size, hidden_size):
    """Deterministic init mimicking nn.Linear (uniform +/- 1/sqrt(fan_in))."""
    ks = jax.random.split(key, 6)

    def linear(kw, kb, fan_in, fan_out):
        bound = 1.0 / jnp.sqrt(fan_in)
        w = jax.random.uniform(kw, (fan_in, fan_out), jnp.float32, -bound, bound)
        b = jax.random.uniform(kb, (1, fan_out), jnp.float32, -bound, bound)
        return w, b

    w1, b1 = linear(ks[0], ks[1], in_size, hidden_size)
    w2, b2 = linear(ks[2], ks[3], hidden_size, hidden_size)
    w3, b3 = linear(ks[4], ks[5], hidden_size, 1)
    return (w1, b1, w2, b2, w3, b3.reshape((1,)))


if __name__ == "__main__":
    # Small deterministic shapes consistent with the module.  B=256 now runs
    # as a single fat grid step (per the tile-size feedback).
    B, STATE, ACTION, HIDDEN = 256, 12, 4, 32
    IN_SIZE = STATE + ACTION

    key = jax.random.PRNGKey(0)
    k_s, k_a, k_p = jax.random.split(key, 3)
    states = jax.random.normal(k_s, (B, STATE), jnp.float32)
    actions = jax.random.normal(k_a, (B, ACTION), jnp.float32)
    params = init_params(k_p, IN_SIZE, HIDDEN)

    reward = reward_model_forward(states, actions, params)
    reward = jax.block_until_ready(reward)

    # Pure-JAX reference: f32 math (HIGHEST precision) on the same
    # bf16-rounded activations/weights the kernel consumes, so the only
    # difference vs. the kernel is f32 accumulation order.
    w1, b1, w2, b2, w3, b3 = params
    q = lambda x: x.astype(jnp.bfloat16).astype(jnp.float32)
    inp = jnp.concatenate([q(states), q(actions)], axis=-1)
    h = jnp.maximum(
        jnp.dot(inp, q(w1), precision=lax.Precision.HIGHEST) + b1, 0.0)
    h = jnp.maximum(
        jnp.dot(h, q(w2), precision=lax.Precision.HIGHEST) + b2, 0.0)
    ref = jnp.dot(h, w3, precision=lax.Precision.HIGHEST)[:, 0] + b3[0]

    assert reward.shape == (B,)
    assert jnp.allclose(reward, ref, atol=2e-3, rtol=2e-3)
    print("KERNEL_OK")
</pallas_src>

<mosaic_0001>
module attributes {stable_mosaic.version = 11 : i64} {
  func.func @reward_mlp_kernel(%arg0: i32, %arg1: memref<256x12xbf16, #tpu.memory_space<vmem>>, %arg2: memref<256x4xbf16, #tpu.memory_space<vmem>>, %arg3: memref<12x32xbf16, #tpu.memory_space<vmem>>, %arg4: memref<4x32xbf16, #tpu.memory_space<vmem>>, %arg5: memref<1x32xf32, #tpu.memory_space<vmem>>, %arg6: memref<32x32xbf16, #tpu.memory_space<vmem>>, %arg7: memref<1x32xf32, #tpu.memory_space<vmem>>, %arg8: memref<1x32xf32, #tpu.memory_space<vmem>>, %arg9: memref<1xf32, #tpu.memory_space<smem>>, %arg10: memref<1x256xf32, #tpu.memory_space<vmem>>) attributes {dimension_semantics = [#tpu.dimension_semantics<arbitrary>], iteration_bounds = array<i64: 1>, scalar_prefetch = 0 : i64, scratch_operands = 0 : i64, tpu.core_type = #tpu.core_type<tc>, window_params = [{transform_indices = @transform_0, window_bounds = array<i64: 256, 12>}, {transform_indices = @transform_1, window_bounds = array<i64: 256, 4>}, {pipeline_mode = #tpu.pipeline_mode<synchronous>, transform_indices = @transform_2, window_bounds = array<i64: 12, 32>}, {pipeline_mode = #tpu.pipeline_mode<synchronous>, transform_indices = @transform_3, window_bounds = array<i64: 4, 32>}, {pipeline_mode = #tpu.pipeline_mode<synchronous>, transform_indices = @transform_4, window_bounds = array<i64: 1, 32>}, {pipeline_mode = #tpu.pipeline_mode<synchronous>, transform_indices = @transform_5, window_bounds = array<i64: 32, 32>}, {pipeline_mode = #tpu.pipeline_mode<synchronous>, transform_indices = @transform_6, window_bounds = array<i64: 1, 32>}, {pipeline_mode = #tpu.pipeline_mode<synchronous>, transform_indices = @transform_7, window_bounds = array<i64: 1, 32>}, {transform_indices = @transform_8, window_bounds = array<i64: 1>}, {transform_indices = @transform_9, window_bounds = array<i64: 1, 256>}]} {
    %c0 = arith.constant 0 : index
    %c0_0 = arith.constant 0 : index
    %0 = vector.load %arg1[%c0, %c0_0] : memref<256x12xbf16, #tpu.memory_space<vmem>>, vector<256x12xbf16>
    %c0_1 = arith.constant 0 : index
    %c0_2 = arith.constant 0 : index
    %1 = vector.load %arg3[%c0_1, %c0_2] : memref<12x32xbf16, #tpu.memory_space<vmem>>, vector<12x32xbf16>
    %cst = arith.constant dense<0.000000e+00> : vector<256x32xf32>
    %2 = tpu.matmul %0, %1, %cst {dimension_numbers = #tpu.dot_dimension_numbers<[1], [0], [0], [1], [0, 0, 1, 1], [], []>} : vector<256x12xbf16>, vector<12x32xbf16>, vector<256x32xf32> -> vector<256x32xf32>
    %c0_3 = arith.constant 0 : index
    %c0_4 = arith.constant 0 : index
    %3 = vector.load %arg2[%c0_3, %c0_4] : memref<256x4xbf16, #tpu.memory_space<vmem>>, vector<256x4xbf16>
    %c0_5 = arith.constant 0 : index
    %c0_6 = arith.constant 0 : index
    %4 = vector.load %arg4[%c0_5, %c0_6] : memref<4x32xbf16, #tpu.memory_space<vmem>>, vector<4x32xbf16>
    %cst_7 = arith.constant dense<0.000000e+00> : vector<256x32xf32>
    %5 = tpu.matmul %3, %4, %cst_7 {dimension_numbers = #tpu.dot_dimension_numbers<[1], [0], [0], [1], [0, 0, 1, 1], [], []>} : vector<256x4xbf16>, vector<4x32xbf16>, vector<256x32xf32> -> vector<256x32xf32>
    %6 = arith.addf %2, %5 : vector<256x32xf32>
    %c0_8 = arith.constant 0 : index
    %c0_9 = arith.constant 0 : index
    %7 = vector.load %arg5[%c0_8, %c0_9] : memref<1x32xf32, #tpu.memory_space<vmem>>, vector<1x32xf32>
    %8 = vector.broadcast %7 : vector<1x32xf32> to vector<256x32xf32>
    %9 = arith.addf %6, %8 : vector<256x32xf32>
    %cst_10 = arith.constant 0.000000e+00 : f32
    %10 = vector.broadcast %cst_10 : f32 to vector<256x32xf32>
    %11 = arith.maximumf %9, %10 : vector<256x32xf32>
    %c0_11 = arith.constant 0 : index
    %c0_12 = arith.constant 0 : index
    %12 = vector.load %arg6[%c0_11, %c0_12] : memref<32x32xbf16, #tpu.memory_space<vmem>>, vector<32x32xbf16>
    %13 = arith.extf %12 : vector<32x32xbf16> to vector<32x32xf32>
    %cst_13 = arith.constant dense<0.000000e+00> : vector<256x32xf32>
    %14 = tpu.matmul %11, %13, %cst_13 {dimension_numbers = #tpu.dot_dimension_numbers<[1], [0], [0], [1], [0, 0, 1, 1], [], []>} : vector<256x32xf32>, vector<32x32xf32>, vector<256x32xf32> -> vector<256x32xf32>
    %c0_14 = arith.constant 0 : index
    %c0_15 = arith.constant 0 : index
    %15 = vector.load %arg7[%c0_14, %c0_15] : memref<1x32xf32, #tpu.memory_space<vmem>>, vector<1x32xf32>
    %16 = vector.broadcast %15 : vector<1x32xf32> to vector<256x32xf32>
    %17 = arith.addf %14, %16 : vector<256x32xf32>
    %cst_16 = arith.constant 0.000000e+00 : f32
    %18 = vector.broadcast %cst_16 : f32 to vector<256x32xf32>
    %19 = arith.maximumf %17, %18 : vector<256x32xf32>
    %c0_17 = arith.constant 0 : index
    %c0_18 = arith.constant 0 : index
    %20 = vector.load %arg8[%c0_17, %c0_18] : memref<1x32xf32, #tpu.memory_space<vmem>>, vector<1x32xf32>
    %21 = vector.broadcast %20 : vector<1x32xf32> to vector<256x32xf32>
    %22 = arith.mulf %19, %21 : vector<256x32xf32>
    %cst_19 = arith.constant dense<0.000000e+00> : vector<256xf32>
    %23 = vector.multi_reduction <add>, %22, %cst_19 [1] : vector<256x32xf32> to vector<256xf32>
    %c0_20 = arith.constant 0 : index
    %24 = memref.load %arg9[%c0_20] : memref<1xf32, #tpu.memory_space<smem>>
    %25 = vector.broadcast %24 : f32 to vector<256xf32>
    %26 = arith.addf %23, %25 : vector<256xf32>
    %c0_21 = arith.constant 0 : index
    %c0_22 = arith.constant 0 : index
    %27 = vector.load %arg10[%c0_21, %c0_22] : memref<1x256xf32, #tpu.memory_space<vmem>>, vector<1x256xf32>
    %28 = vector.shape_cast %27 : vector<1x256xf32> to vector<256xf32>
    %29 = vector.shape_cast %26 : vector<256xf32> to vector<1x256xf32>
    tpu.vector_store %arg10[%c0_21, %c0_22], %29 {strides = array<i32>} : memref<1x256xf32, #tpu.memory_space<vmem>>, vector<1x256xf32>,
    return
  }
  func.func @transform_0(%arg0: i32) -> (i32, i32) {
    %c0_i32 = arith.constant 0 : i32
    %c0_i32_0 = arith.constant 0 : i32
    return %arg0, %c0_i32 : i32, i32
  }
  func.func @transform_1(%arg0: i32) -> (i32, i32) {
    %c0_i32 = arith.constant 0 : i32
    %c0_i32_0 = arith.constant 0 : i32
    return %arg0, %c0_i32 : i32, i32
  }
  func.func @transform_2(%arg0: i32) -> (i32, i32) {
    %c0_i32 = arith.constant 0 : i32
    %c0_i32_0 = arith.constant 0 : i32
    %c0_i32_1 = arith.constant 0 : i32
    return %c0_i32, %c0_i32_0 : i32, i32
  }
  func.func @transform_3(%arg0: i32) -> (i32, i32) {
    %c0_i32 = arith.constant 0 : i32
    %c0_i32_0 = arith.constant 0 : i32
    %c0_i32_1 = arith.constant 0 : i32
    return %c0_i32, %c0_i32_0 : i32, i32
  }
  func.func @transform_4(%arg0: i32) -> (i32, i32) {
    %c0_i32 = arith.constant 0 : i32
    %c0_i32_0 = arith.constant 0 : i32
    %c0_i32_1 = arith.constant 0 : i32
    return %c0_i32, %c0_i32_0 : i32, i32
  }
  func.func @transform_5(%arg0: i32) -> (i32, i32) {
    %c0_i32 = arith.constant 0 : i32
    %c0_i32_0 = arith.constant 0 : i32
    %c0_i32_1 = arith.constant 0 : i32
    return %c0_i32, %c0_i32_0 : i32, i32
  }
  func.func @transform_6(%arg0: i32) -> (i32, i32) {
    %c0_i32 = arith.constant 0 : i32
    %c0_i32_0 = arith.constant 0 : i32
    %c0_i32_1 = arith.constant 0 : i32
    return %c0_i32, %c0_i32_0 : i32, i32
  }
  func.func @transform_7(%arg0: i32) -> (i32, i32) {
    %c0_i32 = arith.constant 0 : i32
    %c0_i32_0 = arith.constant 0 : i32
    %c0_i32_1 = arith.constant 0 : i32
    return %c0_i32, %c0_i32_0 : i32, i32
  }
  func.func @transform_8(%arg0: i32) -> i32 {
    %c0_i32 = arith.constant 0 : i32
    %c0_i32_0 = arith.constant 0 : i32
    return %c0_i32 : i32
  }
  func.func @transform_9(%arg0: i32) -> (i32, i32) {
    %c0_i32 = arith.constant 0 : i32
    %c0_i32_0 = arith.constant 0 : i32
    return %c0_i32, %arg0 : i32, i32
  }
}

</mosaic_0001>

<bundles_post_ra>
// kernel: tpu_custom_call.1
= control target key start
LH: loop header
LB: loop body
LE: loop exit
PB: predicated region body
PF: predicated region fallthrough
CT: control target
= control target key end

     0   :  { %vm231_vm0 = vcmask 1041408   ;;  %vm182_vm1 = vcmask 31744   ;;  %vm530_vm2 = vcmask 1045504   ;;  %vm481_vm3 = vcmask 97280   ;;  %s5982_s0 = inlined_call_operand.vmem [shape: bf16[256,12], index: 0, kind: input, shape index: {}]   ;;  %s5983_s1 = inlined_call_operand.vmem [shape: bf16[256,4], index: 1, kind: input, shape index: {}]   ;;  %s5984_s2 = inlined_call_operand.vmem [shape: bf16[12,32], index: 2, kind: input, shape index: {}]   ;;  %s5985_s3 = inlined_call_operand.vmem [shape: bf16[4,32], index: 3, kind: input, shape index: {}]   ;;  %s5986_s4 = inlined_call_operand.vmem [shape: f32[1,32], index: 4, kind: input, shape index: {}]   ;;  %s5987_s5 = inlined_call_operand.vmem [shape: bf16[32,32], index: 5, kind: input, shape index: {}]   ;;  %s5988_s6 = inlined_call_operand.vmem [shape: f32[1,32], index: 6, kind: input, shape index: {}]   ;;  %s5989_s7 = inlined_call_operand.vmem [shape: f32[1,32], index: 7, kind: input, shape index: {}]   ;;  %s5990_s8 = inlined_call_operand.<no memory space> [shape: f32[1], index: 8, kind: input, shape index: {}]   ;;  %s5991_s9 = inlined_call_operand.hbm [shape: f32[1,256], index: 9, kind: output, shape index: {}]  }
   0x1   :  { %v101_v0 = vld [vmem:[%s5985_s3] sm:$0x3]  ;;  %v4603_v3 = vld [vmem:[%s5983_s1 + $0x8] sm:$0xff]   ;;  %v4605_v5 = vld [vmem:[%s5983_s1 + $0x10] sm:$0xff]  }
   0x2   :  { %v4602_v1 = vld [vmem:[%s5983_s1] sm:$0xff]   ;;  %4594 = vmatprep.subr.msk.bf16.mxu0 %vm231_vm0, %v101_v0  ;;  %v233_v2 = vsel %vm231_vm0, %v101_v0, 0  ;;  %4595 = vmatprep.subr.msk.bf16.mxu1 %vm231_vm0, %v101_v0  ;;  %v4606_v7 = vld [vmem:[%s5983_s1 + $0x18] sm:$0xff]   ;;  %v4608_v9 = vld [vmem:[%s5983_s1 + $0x28] sm:$0xff]  }
   0x3   :  { %4429 = vmatpush3.bf16.msra.mxu0 %v233_v2  ;;  %4430 = vmatprep.mubr.msk.bf16.mxu0 %vm182_vm1, %v4602_v1  ;;  %v4604_v4 = vld [vmem:[%s5984_s2] sm:$0x3f]   ;;  %v4609_v10 = vld [vmem:[%s5983_s1 + $0x30] sm:$0xff]   ;;  %v4621_v12 = vld [vmem:[%s5983_s1 + $0x48] sm:$0xff]  }
   0x4   :  { %4561 = vmatpush3.bf16.msra.mxu1 %v233_v2  ;;  %4596 = vmatprep.subr.msk.bf16.mxu0 %vm530_vm2, %v4604_v4  ;;  %v532_v6 = vsel %vm530_vm2, %v4604_v4, 0  ;;  %v4607_v8 = vld [vmem:[%s5983_s1 + $0x20] sm:$0xff]   ;;  %v4623_v13 = vld [vmem:[%s5983_s1 + $0x50] sm:$0xff]   ;;  %v4610_v14 = vld [vmem:[%s5983_s1 + $0x38] sm:$0xff]  }
   0x5   :  { %v4619_v11 = vld [vmem:[%s5983_s1 + $0x40] sm:$0xff]   ;;  %v4625_v16 = vld [vmem:[%s5983_s1 + $0x58] sm:$0xff]   ;;  %v4612_v18 = vld [vmem:[%s5982_s0 + $0x8] sm:$0xff]  }
   0x6   :  { %4431 = vmatmul.mubr.msk.bf16.vlgmr.msra.gmra.mrb[0].mxu0 %vm182_vm1, %v4603_v3  ;;  %4446 = vmatprep.mubr.msk.bf16.mxu1 %vm182_vm1, %v4619_v11  ;;  %v4611_v15 = vld [vmem:[%s5982_s0] sm:$0xff]   ;;  %v4613_v19 = vld [vmem:[%s5982_s0 + $0x10] sm:$0xff]   ;;  %v4629_v21 = vld [vmem:[%s5983_s1 + $0x68] sm:$0xff]  }
   0x7   :  { %4463 = vmatpush3.bf16.msra.mxu0 %v532_v6  ;;  %4434 = vmatprep.mubr.msk.bf16.mxu0 %vm182_vm1, %v4605_v5  ;;  %v4627_v17 = vld [vmem:[%s5983_s1 + $0x60] sm:$0xff]   ;;  %v4357_v22 = vld [vmem:[%s5987_s5 + $0x8] sm:$0xff]  }
   0x8   :  { %4447 = vmatmul.mubr.msk.bf16.vlgmr.msra.gmra.mrb[0].mxu1 %vm182_vm1, %v4621_v12  ;;  %v4350_v20 = vld [vmem:[%s5987_s5] sm:$0xff]  }
   0x9   :  { %4450 = vmatprep.mubr.msk.bf16.mxu1 %vm182_vm1, %v4623_v13  ;;  %4553 = vmatprep.subr.bf16.mxu1 %v4350_v20 }
   0xe   :  { %4435 = vmatmul.mubr.msk.bf16.gmra.mrb[4].mxu0 %vm182_vm1, %v4606_v7 }
   0xf   :  { %4438 = vmatprep.mubr.msk.bf16.mxu0 %vm182_vm1, %v4607_v8 }
  0x10   :  { %4451 = vmatmul.mubr.msk.bf16.gmra.mrb[4].mxu1 %vm182_vm1, %v4625_v16 }
  0x11   :  { %4454 = vmatprep.mubr.msk.bf16.mxu1 %vm182_vm1, %v4627_v17 }
  0x16   :  { %4439 = vmatmul.mubr.msk.bf16.gmra.mrb[8].mxu0 %vm182_vm1, %v4608_v9 }
  0x17   :  { %4442 = vmatprep.mubr.msk.bf16.mxu0 %vm182_vm1, %v4609_v10 }
  0x1e   :  { %4443 = vmatmul.mubr.msk.bf16.gmra.mrb[12].mxu0 %vm182_vm1, %v4610_v14 }
  0x1f   :  { %4464 = vmatprep.mubr.msk.bf16.mxu0 %vm481_vm3, %v4611_v15 }
  0x20   :  { %15 = vsyncpa [#allocation4], 0  ;;  %v4631_v23 = vld [vmem:[%s5983_s1 + $0x70] sm:$0xff]   ;;  %4555 = vmatpush3.bf16.msra.mxu1 %v4350_v20  ;;  %v4614_v24 = vld [vmem:[%s5982_s0 + $0x18] sm:$0xff]   ;;  %vm781_vm4 = vcmask 261120   ;;  %vm4035_vm5 = vcmask 130112  }
  0x21   :  { %4557 = vmatprep.subr.bf16.mxu1 %v4357_v22  ;;  %4455 = vmatmul.mubr.msk.bf16.gmra.mrb[8].mxu1 %vm182_vm1, %v4629_v21  ;;  %v4615_v25 = vld [vmem:[%s5982_s0 + $0x20] sm:$0xff]   ;;  %v4633_v26 = vld [vmem:[%s5983_s1 + $0x78] sm:$0xff]   ;;  %v4616_v27 = vld [vmem:[%s5982_s0 + $0x28] sm:$0xff]   ;;  %vm4042_vm6 = vcmask 195712   ;;  %vm4049_vm7 = vcmask 261312   ;;  %vm4056_vm8 = vcmask 326912  }
  0x22   :  { %4458 = vmatprep.mubr.msk.bf16.mxu1 %vm182_vm1, %v4631_v23  ;;  %v4617_v28 = vld [vmem:[%s5982_s0 + $0x30] sm:$0xff]   ;;  %v4618_v29 = vld [vmem:[%s5982_s0 + $0x38] sm:$0xff]   ;;  %v4620_v30 = vld [vmem:[%s5982_s0 + $0x40] sm:$0xff]   ;;  %vm4063_vm9 = vcmask 392512   ;;  %vm4070_vm10 = vcmask 458112   ;;  %vm4077_vm11 = vcmask 523712  }
  0x23   :  { %v4622_v31 = vld [vmem:[%s5982_s0 + $0x48] sm:$0xff]   ;;  %v4624_v32 = vld [vmem:[%s5982_s0 + $0x50] sm:$0xff]   ;;  %v4626_v33 = vld [vmem:[%s5982_s0 + $0x58] sm:$0xff]   ;;  %vm4084_vm12 = vcmask 589312   ;;  %vm4091_vm13 = vcmask 654912   ;;  %vm4098_vm14 = vcmask 720512  }
  0x24   :  { %4559 = vmatpush3.bf16.msra.mxu1 %v4357_v22  ;;  %v4628_v34 = vld [vmem:[%s5982_s0 + $0x60] sm:$0xff]   ;;  %v4630_v35 = vld [vmem:[%s5982_s0 + $0x68] sm:$0xff]   ;;  %v4632_v36 = vld [vmem:[%s5982_s0 + $0x70] sm:$0xff]   ;;  %vm4105_vm15 = vcmask 786112   ;;  %vm4112_vm0 = vcmask 851712   ;;  %vm4126_vm2 = vcmask 982912  }
  0x25   :  { %v4634_v37 = vld [vmem:[%s5982_s0 + $0x78] sm:$0xff]   ;;  %v4871_v46 = vld [vmem:[%s5986_s4] ss:$0 sm:$0xff] }
  0x26   :  { %4465 = vmatmul.mubr.msk.bf16.vlgmr.msra.gmra.mrb[0].mxu0 %vm481_vm3, %v4612_v18 }
  0x27   :  { %4468 = vmatprep.mubr.msk.bf16.mxu0 %vm481_vm3, %v4613_v19 }
  0x29   :  { %4459 = vmatmul.mubr.msk.bf16.gmra.mrb[12].mxu1 %vm182_vm1, %v4633_v26  ;;  %vm4119_vm1 = vcmask 917312  }
  0x2e   :  { %4469 = vmatmul.mubr.msk.bf16.gmra.mrb[4].mxu0 %vm481_vm3, %v4614_v24 }
  0x2f   :  { %4472 = vmatprep.mubr.msk.bf16.mxu0 %vm481_vm3, %v4615_v25 }
  0x36   :  { %4473 = vmatmul.mubr.msk.bf16.gmra.mrb[8].mxu0 %vm481_vm3, %v4616_v27 }
  0x37   :  { %4476 = vmatprep.mubr.msk.bf16.mxu0 %vm481_vm3, %v4617_v28 }
  0x3e   :  { %4477 = vmatmul.mubr.msk.bf16.gmra.mrb[12].mxu0 %vm481_vm3, %v4618_v29 }
  0x3f   :  { %4480 = vmatprep.mubr.msk.bf16.mxu0 %vm481_vm3, %v4620_v30 }
  0x46   :  { %4481 = vmatmul.mubr.msk.bf16.gmra.mrb[16].mxu0 %vm481_vm3, %v4622_v31 }
  0x47   :  { %4484 = vmatprep.mubr.msk.bf16.mxu0 %vm481_vm3, %v4624_v32 }
  0x4e   :  { %4485 = vmatmul.mubr.msk.bf16.gmra.mrb[20].mxu0 %vm481_vm3, %v4626_v33 }
  0x4f   :  { %4488 = vmatprep.mubr.msk.bf16.mxu0 %vm481_vm3, %v4628_v34 }
  0x56   :  { %4489 = vmatmul.mubr.msk.bf16.gmra.mrb[24].mxu0 %vm481_vm3, %v4630_v35 }
  0x57   :  { %4492 = vmatprep.mubr.msk.bf16.mxu0 %vm481_vm3, %v4632_v36 }
  0x5e   :  { %4493 = vmatmul.mubr.msk.bf16.gmra.mrb[28].mxu0 %vm481_vm3, %v4634_v37  ;;  %vm4133_vm3 = vcmask 1048512  }
  0xdb   :  { %v4852_v38 = vpop.f32.mrb[0].mxu1 }
  0xdc   :  { %v4854_v39 = vpop.f32.mrb[1].mxu1 }
  0xdd   :  { %v4856_v40 = vpop.f32.mrb[2].mxu1 }
  0xde   :  { %v4858_v41 = vpop.f32.mrb[3].mxu1 }
  0xe3   :  { %v4860_v42 = vpop.f32.mrb[4].mxu1 }
  0xe4   :  { %v4862_v43 = vpop.f32.mrb[5].mxu1 }
  0xe5   :  { %v4864_v44 = vpop.f32.mrb[6].mxu1 }
  0xe6   :  { %v4866_v45 = vpop.f32.mrb[7].mxu1 }
  0xf4   :  { %v4873_v49 = vpop.f32.mrb[8].mxu1 }
  0xf5   :  { %v4876_v52 = vpop.f32.mrb[9].mxu1 }
  0xf6   :  { %v4879_v55 = vpop.f32.mrb[10].mxu1 }
  0xf7   :  { %v4882_v58 = vpop.f32.mrb[11].mxu1 }
  0xf9   :  { %v4466_v47 = vpop.f32.mrb[0].mxu0 }
  0xfa   :  { %v568_v48 = vpop.f32.mrb[1].mxu0  ;;  %v704_v53 = vadd.f32 %v4466_v47, %v4871_v46 }
  0xfb   :  { %v702_v50 = vadd.f32 %v4871_v46, %v568_v48  ;;  %v4467_v51 = vpop.f32.mrb[2].mxu0 }
  0xfc   :  { %v571_v54 = vpop.f32.mrb[3].mxu0  ;;  %v705_v59 = vadd.f32 %v4467_v51, %v4871_v46  ;;  %v736_v61 = vmax.f32 %v704_v53, 0.0  ;;  %v4888_v0 = vpop.f32.mrb[12].mxu1 }
  0xfd   :  { %v734_v56 = vmax.f32 %v702_v50, 0.0  ;;  %v703_v57 = vadd.f32 %v4871_v46, %v571_v54  ;;  %v4891_v4 = vpop.f32.mrb[13].mxu1 }
  0xfe   :  { %v737_v1 = vmax.f32 %v705_v59, 0.0  ;;  %v4894_v7 = vpop.f32.mrb[14].mxu1 }
  0xff   :  { %v735_v60 = vmax.f32 %v703_v57, 0.0  ;;  %4504 = vmatprep.mubr.msk.f32.mxu1 %vm781_vm4, %v734_v56  ;;  %v4898_v10 = vpop.f32.mrb[15].mxu1 }
 0x101   :  { %v4470_v62 = vpop.f32.mrb[4].mxu0  ;;  %4505 = vmatmul.mubr.msk.f32.vlgmr.msra.gmra.mrb[16].mxu1 %vm781_vm4, %v735_v60 }
 0x102   :  { %v584_v63 = vpop.f32.mrb[5].mxu0  ;;  %4507 = vmatprep.mubr.msk.f32.mxu1 %vm781_vm4, %v736_v61  ;;  %v708_v5 = vadd.f32 %v4470_v62, %v4871_v46 }
 0x103   :  { %v706_v2 = vadd.f32 %v4871_v46, %v584_v63  ;;  %v4471_v3 = vpop.f32.mrb[6].mxu0 }
 0x104   :  { %v587_v6 = vpop.f32.mrb[7].mxu0  ;;  %v709_v11 = vadd.f32 %v4471_v3, %v4871_v46  ;;  %v740_v13 = vmax.f32 %v708_v5, 0.0 }
 0x105   :  { %v738_v8 = vmax.f32 %v706_v2, 0.0  ;;  %v707_v9 = vadd.f32 %v4871_v46, %v587_v6  ;;  %4508 = vmatmul.mubr.msk.f32.gmra.mrb[18].mxu1 %vm781_vm4, %v737_v1 }
 0x106   :  { %v741_v16 = vmax.f32 %v709_v11, 0.0 }
 0x107   :  { %v739_v12 = vmax.f32 %v707_v9, 0.0  ;;  %4510 = vmatprep.mubr.msk.f32.mxu1 %vm781_vm4, %v738_v8 }
 0x109   :  { %v4474_v14 = vpop.f32.mrb[8].mxu0  ;;  %4511 = vmatmul.mubr.msk.f32.gmra.mrb[20].mxu1 %vm781_vm4, %v739_v12 }
 0x10a   :  { %v600_v15 = vpop.f32.mrb[9].mxu0  ;;  %4513 = vmatprep.mubr.msk.f32.mxu1 %vm781_vm4, %v740_v13  ;;  %v712_v19 = vadd.f32 %v4474_v14, %v4871_v46 }
 0x10b   :  { %v710_v17 = vadd.f32 %v4871_v46, %v600_v15  ;;  %v4475_v18 = vpop.f32.mrb[10].mxu0 }
 0x10c   :  { %v603_v20 = vpop.f32.mrb[11].mxu0  ;;  %v713_v23 = vadd.f32 %v4475_v18, %v4871_v46  ;;  %v744_v25 = vmax.f32 %v712_v19, 0.0 }
 0x10d   :  { %v742_v21 = vmax.f32 %v710_v17, 0.0  ;;  %v711_v22 = vadd.f32 %v4871_v46, %v603_v20  ;;  %4514 = vmatmul.mubr.msk.f32.gmra.mrb[22].mxu1 %vm781_vm4, %v741_v16 }
 0x10e   :  { %v745_v28 = vmax.f32 %v713_v23, 0.0 }
 0x10f   :  { %v743_v24 = vmax.f32 %v711_v22, 0.0  ;;  %4516 = vmatprep.mubr.msk.f32.mxu1 %vm781_vm4, %v742_v21 }
 0x111   :  { %v4478_v26 = vpop.f32.mrb[12].mxu0  ;;  %4517 = vmatmul.mubr.msk.f32.gmra.mrb[24].mxu1 %vm781_vm4, %v743_v24 }
 0x112   :  { %v616_v27 = vpop.f32.mrb[13].mxu0  ;;  %4519 = vmatprep.mubr.msk.f32.mxu1 %vm781_vm4, %v744_v25  ;;  %v716_v31 = vadd.f32 %v4478_v26, %v4871_v46 }
 0x113   :  { %v714_v29 = vadd.f32 %v4871_v46, %v616_v27  ;;  %v4479_v30 = vpop.f32.mrb[14].mxu0 }
 0x114   :  { %v619_v32 = vpop.f32.mrb[15].mxu0  ;;  %v717_v35 = vadd.f32 %v4479_v30, %v4871_v46  ;;  %v748_v37 = vmax.f32 %v716_v31, 0.0 }
 0x115   :  { %v746_v33 = vmax.f32 %v714_v29, 0.0  ;;  %v715_v34 = vadd.f32 %v4871_v46, %v619_v32  ;;  %4520 = vmatmul.mubr.msk.f32.gmra.mrb[26].mxu1 %vm781_vm4, %v745_v28 }
 0x116   :  { %v749_v51 = vmax.f32 %v717_v35, 0.0 }
 0x117   :  { %v747_v36 = vmax.f32 %v715_v34, 0.0  ;;  %4522 = vmatprep.mubr.msk.f32.mxu1 %vm781_vm4, %v746_v33 }
 0x119   :  { %v4482_v47 = vpop.f32.mrb[16].mxu0  ;;  %4523 = vmatmul.mubr.msk.f32.gmra.mrb[28].mxu1 %vm781_vm4, %v747_v36 }
 0x11a   :  { %v641_v48 = vadd.f32 %v4482_v47, %v4852_v38  ;;  %v632_v50 = vpop.f32.mrb[17].mxu0  ;;  %4525 = vmatprep.mubr.msk.f32.mxu1 %vm781_vm4, %v748_v37 }
 0x11b   :  { %v633_v53 = vadd.f32 %v632_v50, %v4854_v39  ;;  %v4483_v54 = vpop.f32.mrb[18].mxu0 }
 0x11c   :  { %v644_v56 = vadd.f32 %v4483_v54, %v4856_v40  ;;  %v635_v57 = vpop.f32.mrb[19].mxu0  ;;  %v720_v61 = vadd.f32 %v4871_v46, %v641_v48 }
 0x11d   :  { %v718_v59 = vadd.f32 %v4871_v46, %v633_v53  ;;  %v636_v60 = vadd.f32 %v635_v57, %v4858_v41  ;;  %4526 = vmatmul.mubr.msk.f32.gmra.mrb[30].mxu1 %vm781_vm4, %v749_v51 }
 0x11e   :  { %v721_v63 = vadd.f32 %v4871_v46, %v644_v56  ;;  %v752_v39 = vmax.f32 %v720_v61, 0.0  ;;  %v4979_v56 = vld [vmem:[%s5989_s7] ss:$0 sm:$0xff] }
 0x11f   :  { %v750_v62 = vmax.f32 %v718_v59, 0.0  ;;  %v719_v38 = vadd.f32 %v4871_v46, %v636_v60 }
 0x120   :  { %v753_v9 = vmax.f32 %v721_v63, 0.0 }
 0x121   :  { %v751_v1 = vmax.f32 %v719_v38, 0.0  ;;  %v4486_v2 = vpop.f32.mrb[20].mxu0  ;;  %4528 = vmatprep.mubr.msk.f32.mxu1 %vm781_vm4, %v750_v62 }
 0x122   :  { %v657_v40 = vadd.f32 %v4486_v2, %v4860_v42  ;;  %v648_v3 = vpop.f32.mrb[21].mxu0 }
 0x123   :  { %v649_v5 = vadd.f32 %v648_v3, %v4862_v43  ;;  %v4487_v41 = vpop.f32.mrb[22].mxu0  ;;  %4529 = vmatmul.mubr.msk.f32.gmra.mrb[32].mxu1 %vm781_vm4, %v751_v1 }
 0x124   :  { %v660_v6 = vadd.f32 %v4487_v41, %v4864_v44  ;;  %v651_v8 = vpop.f32.mrb[23].mxu0  ;;  %4531 = vmatprep.mubr.msk.f32.mxu1 %vm781_vm4, %v752_v39  ;;  %v724_v13 = vadd.f32 %v4871_v46, %v657_v40 }
 0x125   :  { %v722_v11 = vadd.f32 %v4871_v46, %v649_v5  ;;  %v652_v12 = vadd.f32 %v651_v8, %v4866_v45 }
 0x126   :  { %v725_v43 = vadd.f32 %v4871_v46, %v660_v6  ;;  %v756_v44 = vmax.f32 %v724_v13, 0.0 }
 0x127   :  { %v754_v14 = vmax.f32 %v722_v11, 0.0  ;;  %v723_v42 = vadd.f32 %v4871_v46, %v652_v12  ;;  %4532 = vmatmul.mubr.msk.f32.gmra.mrb[34].mxu1 %vm781_vm4, %v753_v9 }
 0x128   :  { %v757_v22 = vmax.f32 %v725_v43, 0.0 }
 0x129   :  { %v755_v15 = vmax.f32 %v723_v42, 0.0  ;;  %v4490_v16 = vpop.f32.mrb[24].mxu0  ;;  %4534 = vmatprep.mubr.msk.f32.mxu1 %vm781_vm4, %v754_v14 }
 0x12a   :  { %v673_v17 = vadd.f32 %v4490_v16, %v4873_v49  ;;  %v664_v18 = vpop.f32.mrb[25].mxu0 }
 0x12b   :  { %v665_v19 = vadd.f32 %v664_v18, %v4876_v52  ;;  %v4491_v45 = vpop.f32.mrb[26].mxu0  ;;  %4535 = vmatmul.mubr.msk.f32.gmra.mrb[36].mxu1 %vm781_vm4, %v755_v15 }
 0x12c   :  { %v676_v20 = vadd.f32 %v4491_v45, %v4879_v55  ;;  %v667_v21 = vpop.f32.mrb[27].mxu0  ;;  %4537 = vmatprep.mubr.msk.f32.mxu1 %vm781_vm4, %v756_v44  ;;  %v728_v25 = vadd.f32 %v4871_v46, %v673_v17 }
 0x12d   :  { %v726_v23 = vadd.f32 %v4871_v46, %v665_v19  ;;  %v668_v24 = vadd.f32 %v667_v21, %v4882_v58 }
 0x12e   :  { %v729_v52 = vadd.f32 %v4871_v46, %v676_v20  ;;  %v760_v55 = vmax.f32 %v728_v25, 0.0 }
 0x12f   :  { %v758_v26 = vmax.f32 %v726_v23, 0.0  ;;  %v727_v49 = vadd.f32 %v4871_v46, %v668_v24  ;;  %4538 = vmatmul.mubr.msk.f32.gmra.mrb[38].mxu1 %vm781_vm4, %v757_v22 }
 0x130   :  { %v761_v35 = vmax.f32 %v729_v52, 0.0 }
 0x131   :  { %v759_v27 = vmax.f32 %v727_v49, 0.0  ;;  %v4494_v28 = vpop.f32.mrb[28].mxu0  ;;  %4540 = vmatprep.mubr.msk.f32.mxu1 %vm781_vm4, %v758_v26 }
 0x132   :  { %v689_v29 = vadd.f32 %v4494_v28, %v4888_v0  ;;  %v680_v30 = vpop.f32.mrb[29].mxu0 }
 0x133   :  { %v681_v31 = vadd.f32 %v680_v30, %v4891_v4  ;;  %v4495_v58 = vpop.f32.mrb[30].mxu0  ;;  %4541 = vmatmul.mubr.msk.f32.gmra.mrb[40].mxu1 %vm781_vm4, %v759_v27 }
 0x134   :  { %v732_v32 = vadd.f32 %v4871_v46, %v689_v29  ;;  %v692_v33 = vadd.f32 %v4495_v58, %v4894_v7  ;;  %v683_v34 = vpop.f32.mrb[31].mxu0  ;;  %4543 = vmatprep.mubr.msk.f32.mxu1 %vm781_vm4, %v760_v55 }
 0x135   :  { %v730_v36 = vadd.f32 %v4871_v46, %v681_v31  ;;  %v684_v37 = vadd.f32 %v683_v34, %v4898_v10  ;;  %v4972_v10 = vld [vmem:[%s5988_s6] ss:$0 sm:$0xff] }
 0x136   :  { %v733_v0 = vadd.f32 %v4871_v46, %v692_v33  ;;  %v764_v48 = vmax.f32 %v732_v32, 0.0 }
 0x137   :  { %v762_v47 = vmax.f32 %v730_v36, 0.0  ;;  %v731_v4 = vadd.f32 %v4871_v46, %v684_v37  ;;  %4544 = vmatmul.mubr.msk.f32.gmra.mrb[42].mxu1 %vm781_vm4, %v761_v35 }
 0x138   :  { %v765_v7 = vmax.f32 %v733_v0, 0.0 }
 0x139   :  { %v763_v50 = vmax.f32 %v731_v4, 0.0  ;;  %4546 = vmatprep.mubr.msk.f32.mxu1 %vm781_vm4, %v762_v47 }
 0x13b   :  { %4547 = vmatmul.mubr.msk.f32.gmra.mrb[44].mxu1 %vm781_vm4, %v763_v50 }
 0x13c   :  { %4549 = vmatprep.mubr.msk.f32.mxu1 %vm781_vm4, %v764_v48 }
 0x13f   :  { %4550 = vmatmul.mubr.msk.f32.gmra.mrb[46].mxu1 %vm781_vm4, %v765_v7 }
 0x1d4   :  { %v4506_v51 = vpop.f32.mrb[16].mxu1 }
 0x1d5   :  { %v950_v46 = vadd.f32 %v4506_v51, %v4972_v10  ;;  %v944_v53 = vpop.f32.mrb[17].mxu1 }
 0x1d6   :  { %v945_v54 = vadd.f32 %v4972_v10, %v944_v53 }
 0x1d7   :  { %v1104_v57 = vmax.f32 %v950_v46, 0.0 }
 0x1d8   :  { %v1103_v59 = vmax.f32 %v945_v54, 0.0  ;;  %v4509_v60 = vpop.f32.mrb[18].mxu1 }
 0x1d9   :  { %v960_v61 = vadd.f32 %v4509_v60, %v4972_v10  ;;  %v954_v62 = vpop.f32.mrb[19].mxu1  ;;  %v1143_v38 = vmul.f32 %v4979_v56, %v1104_v57 }
 0x1da   :  { %v955_v63 = vadd.f32 %v4972_v10, %v954_v62  ;;  %v1142_v39 = vmul.f32 %v4979_v56, %v1103_v59 }
 0x1db   :  { %v1106_v1 = vmax.f32 %v960_v61, 0.0  ;;  %v1177_v2 = vsel %vm781_vm4, %v1143_v38, 0.0 }
 0x1dc   :  { %v1105_v40 = vmax.f32 %v955_v63, 0.0  ;;  %1178 = vadd.xlane.f32.xlu0 %v1177_v2  ;;  %v4512_v3 = vpop.f32.mrb[20].mxu1  ;;  %v1174_v12 = vsel %vm781_vm4, %v1142_v39, 0.0 }
 0x1dd   :  { %v970_v5 = vadd.f32 %v4512_v3, %v4972_v10  ;;  %v964_v41 = vpop.f32.mrb[21].mxu1  ;;  %v1145_v6 = vmul.f32 %v4979_v56, %v1106_v1 }
 0x1de   :  { %v965_v8 = vadd.f32 %v4972_v10, %v964_v41  ;;  %v1144_v13 = vmul.f32 %v4979_v56, %v1105_v40 }
 0x1df   :  { %v1108_v9 = vmax.f32 %v970_v5, 0.0  ;;  %v1183_v11 = vsel %vm781_vm4, %v1145_v6, 0.0 }
 0x1e0   :  { %v1107_v14 = vmax.f32 %v965_v8, 0.0  ;;  %1184 = vadd.xlane.f32.xlu1 %v1183_v11  ;;  %1175 = vadd.xlane.f32.xlu0 %v1174_v12  ;;  %v4515_v42 = vpop.f32.mrb[22].mxu1  ;;  %v1180_v18 = vsel %vm781_vm4, %v1144_v13, 0.0  ;;  %v4659_v8 = vmov 0  }
 0x1e1   :  { %v980_v43 = vadd.f32 %v4515_v42, %v4972_v10  ;;  %v974_v15 = vpop.f32.mrb[23].mxu1  ;;  %v1147_v19 = vmul.f32 %v4979_v56, %v1108_v9  ;;  %4600 = vset.pattern.permute.xlu1 %v4659_v8  ;;  %4601 = vset.pattern.permute.xlu0 %v4659_v8 }
 0x1e2   :  { %v975_v16 = vadd.f32 %v4972_v10, %v974_v15  ;;  %v1146_v44 = vmul.f32 %v4979_v56, %v1107_v14 }
 0x1e3   :  { %v1110_v17 = vmax.f32 %v980_v43, 0.0  ;;  %v1189_v49 = vsel %vm781_vm4, %v1147_v19, 0.0 }
 0x1e4   :  { %v1109_v45 = vmax.f32 %v975_v16, 0.0  ;;  %1181 = vadd.xlane.f32.xlu1 %v1180_v18  ;;  %v4518_v20 = vpop.f32.mrb[24].mxu1  ;;  %v1186_v21 = vsel %vm781_vm4, %v1146_v44, 0.0 }
 0x1e5   :  { %v990_v22 = vadd.f32 %v4518_v20, %v4972_v10  ;;  %1187 = vadd.xlane.f32.xlu0 %v1186_v21  ;;  %v984_v23 = vpop.f32.mrb[25].mxu1  ;;  %v1149_v52 = vmul.f32 %v4979_v56, %v1110_v17 }
 0x1e6   :  { %v985_v24 = vadd.f32 %v4972_v10, %v984_v23  ;;  %v1148_v25 = vmul.f32 %v4979_v56, %v1109_v45 }
 0x1e7   :  { %v1112_v26 = vmax.f32 %v990_v22, 0.0  ;;  %v1195_v33 = vsel %vm781_vm4, %v1149_v52, 0.0 }
 0x1e8   :  { %v1111_v27 = vmax.f32 %v985_v24, 0.0  ;;  %1190 = vadd.xlane.f32.xlu1 %v1189_v49  ;;  %v4521_v28 = vpop.f32.mrb[26].mxu1  ;;  %v1192_v55 = vsel %vm781_vm4, %v1148_v25, 0.0 }
 0x1e9   :  { %v1000_v29 = vadd.f32 %v4521_v28, %v4972_v10  ;;  %1193 = vadd.xlane.f32.xlu0 %v1192_v55  ;;  %v994_v30 = vpop.f32.mrb[27].mxu1  ;;  %v1151_v34 = vmul.f32 %v4979_v56, %v1112_v26 }
 0x1ea   :  { %v995_v31 = vadd.f32 %v4972_v10, %v994_v30  ;;  %v1150_v58 = vmul.f32 %v4979_v56, %v1111_v27 }
 0x1eb   :  { %v1114_v32 = vmax.f32 %v1000_v29, 0.0  ;;  %v1201_v7 = vsel %vm781_vm4, %v1151_v34, 0.0 }
 0x1ec   :  { %v1113_v35 = vmax.f32 %v995_v31, 0.0  ;;  %1196 = vadd.xlane.f32.xlu1 %v1195_v33  ;;  %v4524_v36 = vpop.f32.mrb[28].mxu1  ;;  %v1198_v37 = vsel %vm781_vm4, %v1150_v58, 0.0 }
 0x1ed   :  { %v1010_v0 = vadd.f32 %v4524_v36, %v4972_v10  ;;  %1199 = vadd.xlane.f32.xlu0 %v1198_v37  ;;  %v1004_v47 = vpop.f32.mrb[29].mxu1  ;;  %v1153_v51 = vmul.f32 %v4979_v56, %v1114_v32 }
 0x1ee   :  { %v1005_v4 = vadd.f32 %v4972_v10, %v1004_v47  ;;  %v1152_v48 = vmul.f32 %v4979_v56, %v1113_v35 }
 0x1ef   :  { %v1116_v50 = vmax.f32 %v1010_v0, 0.0  ;;  %v1207_v38 = vsel %vm781_vm4, %v1153_v51, 0.0 }
 0x1f0   :  { %v1115_v46 = vmax.f32 %v1005_v4, 0.0  ;;  %1202 = vadd.xlane.f32.xlu1 %v1201_v7  ;;  %v4527_v53 = vpop.f32.mrb[30].mxu1  ;;  %v1204_v54 = vsel %vm781_vm4, %v1152_v48, 0.0 }
 0x1f1   :  { %v1020_v57 = vadd.f32 %v4527_v53, %v4972_v10  ;;  %1205 = vadd.xlane.f32.xlu0 %v1204_v54  ;;  %v1014_v59 = vpop.f32.mrb[31].mxu1  ;;  %v1155_v63 = vmul.f32 %v4979_v56, %v1116_v50 }
 0x1f2   :  { %v1015_v60 = vadd.f32 %v4972_v10, %v1014_v59  ;;  %v1154_v61 = vmul.f32 %v4979_v56, %v1115_v46 }
 0x1f3   :  { %v1118_v62 = vmax.f32 %v1020_v57, 0.0  ;;  %v1213_v41 = vsel %vm781_vm4, %v1155_v63, 0.0 }
 0x1f4   :  { %v1117_v1 = vmax.f32 %v1015_v60, 0.0  ;;  %1208 = vadd.xlane.f32.xlu1 %v1207_v38  ;;  %v1210_v2 = vsel %vm781_vm4, %v1154_v61, 0.0 }
 0x1f5   :  { %1211 = vadd.xlane.f32.xlu0 %v1210_v2  ;;  %v1157_v6 = vmul.f32 %v4979_v56, %v1118_v62 }
 0x1f6   :  { %v4530_v39 = vpop.f32.mrb[32].mxu1  ;;  %v1156_v40 = vmul.f32 %v4979_v56, %v1117_v1 }
 0x1f7   :  { %v1030_v3 = vadd.f32 %v4530_v39, %v4972_v10  ;;  %v1024_v5 = vpop.f32.mrb[33].mxu1  ;;  %v1219_v15 = vsel %vm781_vm4, %v1157_v6, 0.0 }
 0x1f8   :  { %v1025_v9 = vadd.f32 %v4972_v10, %v1024_v5  ;;  %1214 = vadd.xlane.f32.xlu1 %v1213_v41  ;;  %v1216_v11 = vsel %vm781_vm4, %v1156_v40, 0.0 }
 0x1f9   :  { %v1120_v12 = vmax.f32 %v1030_v3, 0.0  ;;  %1217 = vadd.xlane.f32.xlu0 %v1216_v11 }
 0x1fa   :  { %v1119_v13 = vmax.f32 %v1025_v9, 0.0  ;;  %v4533_v14 = vpop.f32.mrb[34].mxu1 }
 0x1fb   :  { %v1040_v42 = vadd.f32 %v4533_v14, %v4972_v10  ;;  %v1034_v43 = vpop.f32.mrb[35].mxu1  ;;  %v1159_v16 = vmul.f32 %v4979_v56, %v1120_v12 }
 0x1fc   :  { %v1035_v44 = vadd.f32 %v4972_v10, %v1034_v43  ;;  %1220 = vadd.xlane.f32.xlu1 %v1219_v15  ;;  %v1158_v17 = vmul.f32 %v4979_v56, %v1119_v13 }
 0x1fd   :  { %v1122_v18 = vmax.f32 %v1040_v42, 0.0  ;;  %v1225_v23 = vsel %vm781_vm4, %v1159_v16, 0.0 }
 0x1fe   :  { %v1121_v19 = vmax.f32 %v1035_v44, 0.0  ;;  %v4536_v45 = vpop.f32.mrb[36].mxu1  ;;  %v1222_v20 = vsel %vm781_vm4, %v1158_v17, 0.0 }
 0x1ff   :  { %v1050_v21 = vadd.f32 %v4536_v45, %v4972_v10  ;;  %v1044_v22 = vpop.f32.mrb[37].mxu1  ;;  %1223 = vadd.xlane.f32.xlu0 %v1222_v20  ;;  %v1161_v24 = vmul.f32 %v4979_v56, %v1122_v18 }
 0x200   :  { %v1045_v25 = vadd.f32 %v4972_v10, %v1044_v22  ;;  %1226 = vadd.xlane.f32.xlu1 %v1225_v23  ;;  %v1160_v26 = vmul.f32 %v4979_v56, %v1121_v19  ;;  %v1336_v22 = vlaneseq  ;;  %v4660_v23 = vmov 1966171168  }
 0x201   :  { %v1124_v49 = vmax.f32 %v1050_v21, 0.0  ;;  %v1231_v30 = vsel %vm781_vm4, %v1161_v24, 0.0  ;;  %v2365_v24 = vunpack.c.l.s4 %v4660_v23 }
 0x202   :  { %v1123_v52 = vmax.f32 %v1045_v25, 0.0  ;;  %v4539_v27 = vpop.f32.mrb[38].mxu1  ;;  %v1228_v28 = vsel %vm781_vm4, %v1160_v26, 0.0  ;;  %v5076_v25 = vshrl.u32 %v1336_v22, 7  ;;  %v5081_v26 = vstv %s5990_s8  ;;  %s4661_s8 = smov [#allocation3]  }
 0x203   :  { %v1060_v55 = vadd.f32 %v4539_v27, %v4972_v10  ;;  %v1054_v29 = vpop.f32.mrb[39].mxu1  ;;  %1229 = vadd.xlane.f32.xlu0 %v1228_v28  ;;  %v1163_v31 = vmul.f32 %v4979_v56, %v1124_v49  ;;  %v2366_v49 = vunpack.c.0.s8 %v2365_v24  ;;  %s4241_s13 = sshll.u32 %s4661_s8, 4  ;;  %s4242_s13 = int_to_ptr.vmem [resolvable:$true] %s4241_s13 }
 0x204   :  { %v1055_v58 = vadd.f32 %v4972_v10, %v1054_v29  ;;  %1232 = vadd.xlane.f32.xlu1 %v1231_v30  ;;  %v1162_v32 = vmul.f32 %v4979_v56, %v1123_v52  ;;  %v5087_v52 = vsub.s32 1, %v5076_v25  ;;  %v5090_v27 = vsub.s32 2, %v5076_v25  ;;  %s4635_s14 = scalar_lea.vmem %s4242_s13, 32  ;;  %p4640_p1 = scmp.lt.s32.totalorder %s4242_s13, %s4242_s13 }
 0x205   :  { %v1126_v33 = vmax.f32 %v1060_v55, 0.0  ;;  %v1237_v47 = vsel %vm781_vm4, %v1163_v31, 0.0  ;;  %v5093_v28 = vsub.s32 3, %v5076_v25  ;;  %v5096_v29 = vsub.s32 4, %v5076_v25  ;;  %p4636_p0 = scmp.ne.s32.totalorder %s4242_s13, %s4635_s14  ;;  %p4641_p2 = scmp.lt.s32.totalorder %s4635_s14, %s4635_s14 }
 0x206   :  { %v1125_v34 = vmax.f32 %v1055_v58, 0.0  ;;  %v4542_v35 = vpop.f32.mrb[40].mxu1  ;;  %v1234_v36 = vsel %vm781_vm4, %v1162_v32, 0.0  ;;  %v5099_v30 = vsub.s32 5, %v5076_v25  ;;  %v5102_v31 = vsub.s32 6, %v5076_v25 }
 0x207   :  { %v1070_v37 = vadd.f32 %v4542_v35, %v4972_v10  ;;  %v1064_v0 = vpop.f32.mrb[41].mxu1  ;;  %1235 = vadd.xlane.f32.xlu0 %v1234_v36  ;;  %v1165_v4 = vmul.f32 %v4979_v56, %v1126_v33  ;;  %v5105_v58 = vsub.s32 7, %v5076_v25  ;;  %v5109_v33 = vsub.s32 %v2366_v49, %v5076_v25  ;;  %p4642_p3 = por %p4641_p2, %p4640_p1 }
 0x208   :  { %v1065_v48 = vadd.f32 %v4972_v10, %v1064_v0  ;;  %1238 = vadd.xlane.f32.xlu1 %v1237_v47  ;;  %v1164_v50 = vmul.f32 %v4979_v56, %v1125_v34 }
 0x209   :  { %v1128_v7 = vmax.f32 %v1070_v37, 0.0  ;;  %v1243_v59 = vsel %vm781_vm4, %v1165_v4, 0.0  ;;  %p4643_p4 = pnand %p4642_p3, %p4636_p0 }
 0x20a   :  { %v1127_v51 = vmax.f32 %v1065_v48, 0.0  ;;  %v4545_v46 = vpop.f32.mrb[42].mxu1  ;;  %v1240_v53 = vsel %vm781_vm4, %v1164_v50, 0.0 }
 0x20b   :  { %v1080_v54 = vadd.f32 %v4545_v46, %v4972_v10  ;;  %v1074_v57 = vpop.f32.mrb[43].mxu1  ;;  %1241 = vadd.xlane.f32.xlu0 %v1240_v53  ;;  %v1167_v60 = vmul.f32 %v4979_v56, %v1128_v7 }
 0x20c   :  { %v1075_v61 = vadd.f32 %v4972_v10, %v1074_v57  ;;  %1244 = vadd.xlane.f32.xlu1 %v1243_v59  ;;  %v1166_v62 = vmul.f32 %v4979_v56, %v1127_v51 }
 0x20d   :  { %v1130_v38 = vmax.f32 %v1080_v54, 0.0  ;;  %v1249_v3 = vsel %vm781_vm4, %v1167_v60, 0.0 }
 0x20e   :  { %v1129_v63 = vmax.f32 %v1075_v61, 0.0  ;;  %v4548_v1 = vpop.f32.mrb[44].mxu1  ;;  %v1246_v2 = vsel %vm781_vm4, %v1166_v62, 0.0 }
 0x20f   :  { %v1090_v39 = vadd.f32 %v4548_v1, %v4972_v10  ;;  %v1084_v40 = vpop.f32.mrb[45].mxu1  ;;  %1247 = vadd.xlane.f32.xlu0 %v1246_v2  ;;  %v1169_v5 = vmul.f32 %v4979_v56, %v1130_v38 }
 0x210   :  { %v1085_v41 = vadd.f32 %v4972_v10, %v1084_v40  ;;  %1250 = vadd.xlane.f32.xlu1 %v1249_v3  ;;  %v1168_v6 = vmul.f32 %v4979_v56, %v1129_v63 }
 0x211   :  { %v1132_v8 = vmax.f32 %v1090_v39, 0.0  ;;  %v1255_v42 = vsel %vm781_vm4, %v1169_v5, 0.0 }
 0x212   :  { %v1131_v9 = vmax.f32 %v1085_v41, 0.0  ;;  %v4551_v11 = vpop.f32.mrb[46].mxu1  ;;  %v1252_v12 = vsel %vm781_vm4, %v1168_v6, 0.0 }
 0x213   :  { %v1100_v13 = vadd.f32 %v4551_v11, %v4972_v10  ;;  %v1094_v14 = vpop.f32.mrb[47].mxu1  ;;  %1253 = vadd.xlane.f32.xlu0 %v1252_v12  ;;  %v1171_v43 = vmul.f32 %v4979_v56, %v1132_v8 }
 0x214   :  { %v1095_v15 = vadd.f32 %v4972_v10, %v1094_v14  ;;  %1256 = vadd.xlane.f32.xlu1 %v1255_v42  ;;  %v1170_v16 = vmul.f32 %v4979_v56, %v1131_v9 }
 0x215   :  { %v1134_v44 = vmax.f32 %v1100_v13, 0.0  ;;  %v1261_v17 = vsel %vm781_vm4, %v1171_v43, 0.0 }
 0x216   :  { %v1133_v18 = vmax.f32 %v1095_v15, 0.0  ;;  %v1258_v19 = vsel %vm781_vm4, %v1170_v16, 0.0 }
 0x217   :  { %1259 = vadd.xlane.f32.xlu0 %v1258_v19  ;;  %v1173_v45 = vmul.f32 %v4979_v56, %v1134_v44 }
 0x218   :  { %1262 = vadd.xlane.f32.xlu1 %v1261_v17  ;;  %v1172_v20 = vmul.f32 %v4979_v56, %v1133_v18  ;;  %v5084_v56 = vsub.s32 0, %v5076_v25 }
 0x219   :  { %v1267_v10 = vsel %vm781_vm4, %v1173_v45, 0.0 }
 0x21a   :  { %v1264_v21 = vsel %vm781_vm4, %v1172_v20, 0.0  ;;  %vm4232_vm4 = vcmp.lt.s32.totalorder %v1336_v22, 256 }
 0x21b   :  { %1265 = vadd.xlane.f32.xlu0 %v1264_v21 }
 0x21c   :  { %1268 = vadd.xlane.f32.xlu1 %v1267_v10 }
 0x269   :  { %v1179_v55 = vpop.xlane.xlu0 %1178 }
 0x26a   :  { %v1273_v32 = vadd.f32 %v5081_v26, %v1179_v55 }
 0x26c   :  { %v1371_v34 = vrot.slane %v1273_v32, %v5084_v56  ;;  %v1375_v35 = vrot.slane %v1273_v32, %v5087_v52  ;;  %v1379_v36 = vrot.slane %v1273_v32, %v5090_v27  ;;  %v1383_v37 = vrot.slane %v1273_v32, %v5093_v28 }
 0x26d   :  { %v1185_v0 = vpop.xlane.xlu1 %1184  ;;  %v1176_v47 = vpop.xlane.xlu0 %1175  ;;  %v1387_v4 = vrot.slane %v1273_v32, %v5096_v29  ;;  %v1391_v48 = vrot.slane %v1273_v32, %v5099_v30  ;;  %v1395_v50 = vrot.slane %v1273_v32, %v5102_v31  ;;  %v1399_v7 = vrot.slane %v1273_v32, %v5105_v58 }
 0x26e   :  { %v1275_v51 = vadd.f32 %v5081_v26, %v1185_v0  ;;  %v2409_v46 = vcombine.low %v1371_v34, %v1375_v35  ;;  %v2410_v53 = vcombine.low %v1379_v36, %v1383_v37  ;;  %v1272_v54 = vadd.f32 %v5081_v26, %v1176_v47 }
 0x26f   :  { %v2411_v57 = vcombine.low %v1387_v4, %v1391_v48  ;;  %v2412_v59 = vcombine.low %v1395_v50, %v1399_v7 }
 0x270   :  { %v2419_v60 = vrot.slane %v2409_v46, %v5109_v33  ;;  %v2426_v61 = vrot.slane %v2410_v53, %v5109_v33  ;;  %v1435_v62 = vrot.slane %v1275_v51, %v5084_v56  ;;  %v1439_v38 = vrot.slane %v1275_v51, %v5087_v52 }
 0x271   :  { %v1182_v63 = vpop.xlane.xlu1 %1181  ;;  %v2433_v1 = vrot.slane %v2411_v57, %v5109_v33  ;;  %v2440_v2 = vrot.slane %v2412_v59, %v5109_v33  ;;  %v1443_v39 = vrot.slane %v1275_v51, %v5090_v27  ;;  %v1447_v40 = vrot.slane %v1275_v51, %v5093_v28 }
 0x272   :  { %v5130_v3 = vadd.f32 %v5081_v26, %v1182_v63  ;;  %v1188_v5 = vpop.xlane.xlu0 %1187  ;;  %v2441_v41 = vcombine.low %v2419_v60, %v2426_v61  ;;  %v1451_v6 = vrot.slane %v1275_v51, %v5096_v29  ;;  %v1455_v8 = vrot.slane %v1275_v51, %v5099_v30 }
 0x273   :  { %v5135_v9 = vadd.f32 %v5081_v26, %v1188_v5  ;;  %v2442_v11 = vcombine.low %v2433_v1, %v2440_v2  ;;  %v1459_v12 = vrot.slane %v1275_v51, %v5102_v31  ;;  %v1463_v13 = vrot.slane %v1275_v51, %v5105_v58 }
 0x274   :  { %v2449_v14 = vrot.slane %v2441_v41, %v5109_v33  ;;  %v2507_v42 = vcombine.low %v1435_v62, %v1439_v38  ;;  %v2508_v43 = vcombine.low %v1443_v39, %v1447_v40  ;;  %v2509_v15 = vcombine.low %v1451_v6, %v1455_v8 }
 0x275   :  { %v1191_v16 = vpop.xlane.xlu1 %1190  ;;  %v2456_v44 = vrot.slane %v2442_v11, %v5109_v33  ;;  %v2510_v17 = vcombine.low %v1459_v12, %v1463_v13  ;;  %v1339_v18 = vrot.slane %v1272_v54, %v5084_v56  ;;  %v1343_v19 = vrot.slane %v1272_v54, %v5087_v52 }
 0x276   :  { %v5144_v45 = vadd.f32 %v5081_v26, %v1191_v16  ;;  %v1194_v20 = vpop.xlane.xlu0 %1193  ;;  %v2517_v21 = vrot.slane %v2507_v42, %v5109_v33  ;;  %v2524_v10 = vrot.slane %v2508_v43, %v5109_v33  ;;  %v2531_v23 = vrot.slane %v2509_v15, %v5109_v33 }
 0x277   :  { %v5150_v24 = vadd.f32 %v5081_v26, %v1194_v20  ;;  %v2457_v49 = vcombine.low %v2449_v14, %v2456_v44  ;;  %v2538_v55 = vrot.slane %v2510_v17, %v5109_v33  ;;  %v1347_v32 = vrot.slane %v1272_v54, %v5090_v27 }
 0x278   :  { %v2539_v34 = vcombine.low %v2517_v21, %v2524_v10  ;;  %v1351_v35 = vrot.slane %v1272_v54, %v5093_v28  ;;  %v1355_v36 = vrot.slane %v1272_v54, %v5096_v29  ;;  %v1359_v37 = vrot.slane %v1272_v54, %v5099_v30 }
 0x279   :  { %3932 = vperm.xlu1 %4600, %v2457_v49   ;;  %v1197_v0 = vpop.xlane.xlu1 %1196  ;;  %v2540_v47 = vcombine.low %v2531_v23, %v2538_v55  ;;  %v1363_v4 = vrot.slane %v1272_v54, %v5102_v31  ;;  %v1367_v48 = vrot.slane %v1272_v54, %v5105_v58  ;;  %v2360_v50 = vcombine.low %v1339_v18, %v1343_v19 }
 0x27a   :  { %v5160_v7 = vadd.f32 %v5081_v26, %v1197_v0  ;;  %v1200_v51 = vpop.xlane.xlu0 %1199  ;;  %v2547_v46 = vrot.slane %v2539_v34, %v5109_v33  ;;  %v2361_v53 = vcombine.low %v1347_v32, %v1351_v35  ;;  %v2362_v57 = vcombine.low %v1355_v36, %v1359_v37 }
 0x27b   :  { %v5164_v59 = vadd.f32 %v5081_v26, %v1200_v51  ;;  %v2554_v60 = vrot.slane %v2540_v47, %v5109_v33  ;;  %v2363_v61 = vcombine.low %v1363_v4, %v1367_v48  ;;  %v2370_v62 = vrot.slane %v2360_v50, %v5109_v33 }
 0x27c   :  { %v2377_v38 = vrot.slane %v2361_v53, %v5109_v33  ;;  %v2384_v54 = vrot.slane %v2362_v57, %v5109_v33  ;;  %v1403_v63 = vrot.slane %v5130_v3, %v5084_v56  ;;  %v1407_v1 = vrot.slane %v5130_v3, %v5087_v52 }
 0x27d   :  { %v2555_v2 = vcombine.low %v2547_v46, %v2554_v60  ;;  %v2391_v39 = vrot.slane %v2363_v61, %v5109_v33  ;;  %v1203_v40 = vpop.xlane.xlu1 %1202  ;;  %v1411_v5 = vrot.slane %v5130_v3, %v5090_v27  ;;  %v1415_v41 = vrot.slane %v5130_v3, %v5093_v28 }
 0x27e   :  { %v2392_v6 = vcombine.low %v2370_v62, %v2377_v38  ;;  %v5180_v8 = vadd.f32 %v5081_v26, %v1203_v40  ;;  %v1206_v11 = vpop.xlane.xlu0 %1205  ;;  %v1419_v12 = vrot.slane %v5130_v3, %v5096_v29  ;;  %v1423_v13 = vrot.slane %v5130_v3, %v5099_v30 }
 0x27f   :  { %3938 = vperm.xlu1 %4600, %v2555_v2   ;;  %v2393_v14 = vcombine.low %v2384_v54, %v2391_v39  ;;  %v5187_v42 = vadd.f32 %v5081_v26, %v1206_v11  ;;  %v1427_v43 = vrot.slane %v5130_v3, %v5102_v31  ;;  %v1431_v15 = vrot.slane %v5130_v3, %v5105_v58 }
 0x280   :  { %v2400_v16 = vrot.slane %v2392_v6, %v5109_v33  ;;  %v2458_v44 = vcombine.low %v1403_v63, %v1407_v1  ;;  %v2459_v17 = vcombine.low %v1411_v5, %v1415_v41  ;;  %v2460_v18 = vcombine.low %v1419_v12, %v1423_v13 }
 0x281   :  { %v2407_v19 = vrot.slane %v2393_v14, %v5109_v33  ;;  %v2461_v20 = vcombine.low %v1427_v43, %v1431_v15  ;;  %v1209_v21 = vpop.xlane.xlu1 %1208  ;;  %v1499_v10 = vrot.slane %v5144_v45, %v5084_v56  ;;  %v1503_v23 = vrot.slane %v5144_v45, %v5087_v52 }
 0x282   :  { %v2468_v49 = vrot.slane %v2458_v44, %v5109_v33  ;;  %v2475_v55 = vrot.slane %v2459_v17, %v5109_v33  ;;  %v2482_v3 = vrot.slane %v2460_v18, %v5109_v33  ;;  %v5203_v32 = vadd.f32 %v5081_v26, %v1209_v21  ;;  %v1212_v34 = vpop.xlane.xlu0 %1211 }
 0x283   :  { %v2408_v35 = vcombine.low %v2400_v16, %v2407_v19  ;;  %v2489_v36 = vrot.slane %v2461_v20, %v5109_v33  ;;  %v5207_v37 = vadd.f32 %v5081_v26, %v1212_v34  ;;  %v1507_v0 = vrot.slane %v5144_v45, %v5090_v27 }
 0x284   :  { %v2490_v47 = vcombine.low %v2468_v49, %v2475_v55  ;;  %v1511_v4 = vrot.slane %v5144_v45, %v5093_v28  ;;  %v1515_v48 = vrot.slane %v5144_v45, %v5096_v29  ;;  %v1519_v50 = vrot.slane %v5144_v45, %v5099_v30 }
 0x285   :  { %3929 = vperm.xlu0 %4601, %v2408_v35   ;;  %v2491_v51 = vcombine.low %v2482_v3, %v2489_v36  ;;  %v1523_v46 = vrot.slane %v5144_v45, %v5102_v31  ;;  %v1527_v53 = vrot.slane %v5144_v45, %v5105_v58  ;;  %v2605_v57 = vcombine.low %v1499_v10, %v1503_v23  ;;  %v1215_v60 = vpop.xlane.xlu1 %1214 }
 0x286   :  { %v2498_v61 = vrot.slane %v2490_v47, %v5109_v33  ;;  %v2606_v62 = vcombine.low %v1507_v0, %v1511_v4  ;;  %v2607_v38 = vcombine.low %v1515_v48, %v1519_v50  ;;  %v5223_v54 = vadd.f32 %v5081_v26, %v1215_v60  ;;  %v1218_v63 = vpop.xlane.xlu0 %1217 }
 0x287   :  { %v2505_v1 = vrot.slane %v2491_v51, %v5109_v33  ;;  %v2608_v2 = vcombine.low %v1523_v46, %v1527_v53  ;;  %v2615_v39 = vrot.slane %v2605_v57, %v5109_v33  ;;  %v5228_v40 = vadd.f32 %v5081_v26, %v1218_v63 }
 0x288   :  { %v2622_v45 = vrot.slane %v2606_v62, %v5109_v33  ;;  %v2629_v5 = vrot.slane %v2607_v38, %v5109_v33  ;;  %v1467_v41 = vrot.slane %v5135_v9, %v5084_v56  ;;  %v1471_v6 = vrot.slane %v5135_v9, %v5087_v52 }
 0x289   :  { %v2506_v11 = vcombine.low %v2498_v61, %v2505_v1  ;;  %v2636_v12 = vrot.slane %v2608_v2, %v5109_v33  ;;  %v1475_v13 = vrot.slane %v5135_v9, %v5090_v27  ;;  %v1479_v14 = vrot.slane %v5135_v9, %v5093_v28  ;;  %v1221_v43 = vpop.xlane.xlu1 %1220 }
 0x28a   :  { %v2637_v15 = vcombine.low %v2615_v39, %v2622_v45  ;;  %v1483_v16 = vrot.slane %v5135_v9, %v5096_v29  ;;  %v1487_v44 = vrot.slane %v5135_v9, %v5099_v30  ;;  %v1491_v17 = vrot.slane %v5135_v9, %v5102_v31 }
 0x28b   :  { %3935 = vperm.xlu1 %4600, %v2506_v11   ;;  %v2638_v18 = vcombine.low %v2629_v5, %v2636_v12  ;;  %v1495_v19 = vrot.slane %v5135_v9, %v5105_v58  ;;  %v2556_v20 = vcombine.low %v1467_v41, %v1471_v6  ;;  %v2557_v21 = vcombine.low %v1475_v13, %v1479_v14 }
 0x28c   :  { %v2645_v10 = vrot.slane %v2637_v15, %v5109_v33  ;;  %v2558_v23 = vcombine.low %v1483_v16, %v1487_v44  ;;  %v5251_v49 = vadd.f32 %v5081_v26, %v1221_v43  ;;  %v1563_v55 = vrot.slane %v5160_v7, %v5084_v56  ;;  %v1224_v12 = vpop.xlane.xlu0 %1223 }
 0x28d   :  { %v2652_v3 = vrot.slane %v2638_v18, %v5109_v33  ;;  %v2559_v34 = vcombine.low %v1491_v17, %v1495_v19  ;;  %v2566_v35 = vrot.slane %v2556_v20, %v5109_v33  ;;  %v2573_v36 = vrot.slane %v2557_v21, %v5109_v33  ;;  %v1227_v13 = vpop.xlane.xlu1 %1226 }
 0x28e   :  { %v2580_v9 = vrot.slane %v2558_v23, %v5109_v33  ;;  %v1567_v0 = vrot.slane %v5160_v7, %v5087_v52  ;;  %v1571_v47 = vrot.slane %v5160_v7, %v5090_v27  ;;  %v1575_v4 = vrot.slane %v5160_v7, %v5093_v28 }
 0x28f   :  { %v2653_v48 = vcombine.low %v2645_v10, %v2652_v3  ;;  %v2587_v50 = vrot.slane %v2559_v34, %v5109_v33  ;;  %v2588_v51 = vcombine.low %v2566_v35, %v2573_v36  ;;  %v1579_v46 = vrot.slane %v5160_v7, %v5096_v29 }
 0x290   :  { %v1583_v53 = vrot.slane %v5160_v7, %v5099_v30  ;;  %v1587_v57 = vrot.slane %v5160_v7, %v5102_v31  ;;  %v1591_v60 = vrot.slane %v5160_v7, %v5105_v58  ;;  %v2703_v61 = vcombine.low %v1563_v55, %v1567_v0 }
 0x291   :  { %3944 = vperm.xlu1 %4600, %v2653_v48   ;;  %v2589_v62 = vcombine.low %v2580_v9, %v2587_v50  ;;  %v2596_v38 = vrot.slane %v2588_v51, %v5109_v33  ;;  %v2704_v63 = vcombine.low %v1571_v47, %v1575_v4  ;;  %v1627_v1 = vrot.slane %v5180_v8, %v5084_v56  ;;  %v1230_v51 = vpop.xlane.xlu0 %1229 }
 0x292   :  { %v2705_v2 = vcombine.low %v1579_v46, %v1583_v53  ;;  %v2706_v39 = vcombine.low %v1587_v57, %v1591_v60  ;;  %v2713_v45 = vrot.slane %v2703_v61, %v5109_v33  ;;  %v1631_v5 = vrot.slane %v5180_v8, %v5087_v52  ;;  %v1233_v46 = vpop.xlane.xlu1 %1232 }
 0x293   :  { %v2603_v41 = vrot.slane %v2589_v62, %v5109_v33  ;;  %v2720_v7 = vrot.slane %v2704_v63, %v5109_v33  ;;  %v1635_v6 = vrot.slane %v5180_v8, %v5090_v27  ;;  %v1639_v11 = vrot.slane %v5180_v8, %v5093_v28 }
 0x294   :  { %v2727_v14 = vrot.slane %v2705_v2, %v5109_v33  ;;  %v2734_v43 = vrot.slane %v2706_v39, %v5109_v33  ;;  %v1643_v15 = vrot.slane %v5180_v8, %v5096_v29  ;;  %v1647_v16 = vrot.slane %v5180_v8, %v5099_v30 }
 0x295   :  { %v2604_v44 = vcombine.low %v2596_v38, %v2603_v41  ;;  %v2735_v17 = vcombine.low %v2713_v45, %v2720_v7  ;;  %v1651_v18 = vrot.slane %v5180_v8, %v5102_v31  ;;  %v1655_v19 = vrot.slane %v5180_v8, %v5105_v58 }
 0x296   :  { %v2736_v20 = vcombine.low %v2727_v14, %v2734_v43  ;;  %v2801_v21 = vcombine.low %v1627_v1, %v1631_v5  ;;  %v2802_v10 = vcombine.low %v1635_v6, %v1639_v11  ;;  %v2803_v23 = vcombine.low %v1643_v15, %v1647_v16 }
 0x297   :  { %3941 = vperm.xlu1 %4600, %v2604_v44   ;;  %v2743_v55 = vrot.slane %v2735_v17, %v5109_v33  ;;  %v2804_v3 = vcombine.low %v1651_v18, %v1655_v19  ;;  %v5298_v34 = vadd.f32 %v5081_v26, %v1224_v12  ;;  %v5301_v35 = vadd.f32 %v5081_v26, %v1227_v13  ;;  %v1236_v17 = vpop.xlane.xlu0 %1235  ;;  %v1239_v18 = vpop.xlane.xlu1 %1238 }
 0x298   :  { %v2750_v36 = vrot.slane %v2736_v20, %v5109_v33  ;;  %v2811_v9 = vrot.slane %v2801_v21, %v5109_v33  ;;  %v2818_v8 = vrot.slane %v2802_v10, %v5109_v33  ;;  %v2825_v0 = vrot.slane %v2803_v23, %v5109_v33 }
 0x299   :  { %v2832_v47 = vrot.slane %v2804_v3, %v5109_v33  ;;  %v1531_v4 = vrot.slane %v5150_v24, %v5084_v56  ;;  %v1535_v48 = vrot.slane %v5150_v24, %v5087_v52  ;;  %v1539_v50 = vrot.slane %v5150_v24, %v5090_v27 }
 0x29a   :  { %v2751_v53 = vcombine.low %v2743_v55, %v2750_v36  ;;  %v2833_v57 = vcombine.low %v2811_v9, %v2818_v8  ;;  %v1543_v60 = vrot.slane %v5150_v24, %v5093_v28  ;;  %v1547_v61 = vrot.slane %v5150_v24, %v5096_v29 }
 0x29b   :  { %v2834_v62 = vcombine.low %v2825_v0, %v2832_v47  ;;  %v1551_v38 = vrot.slane %v5150_v24, %v5099_v30  ;;  %v1555_v63 = vrot.slane %v5150_v24, %v5102_v31  ;;  %v1559_v1 = vrot.slane %v5150_v24, %v5105_v58 }
 0x29c   :  { %3950 = vperm.xlu1 %4600, %v2751_v53   ;;  %v2841_v2 = vrot.slane %v2833_v57, %v5109_v33  ;;  %v2654_v39 = vcombine.low %v1531_v4, %v1535_v48  ;;  %v2655_v45 = vcombine.low %v1539_v50, %v1543_v60  ;;  %v5326_v5 = vadd.f32 %v5081_v26, %v1230_v51 }
 0x29d   :  { %v2848_v41 = vrot.slane %v2834_v62, %v5109_v33  ;;  %v2656_v7 = vcombine.low %v1547_v61, %v1551_v38  ;;  %v2657_v6 = vcombine.low %v1555_v63, %v1559_v1  ;;  %v5330_v11 = vadd.f32 %v5081_v26, %v1233_v46  ;;  %v1242_v63 = vpop.xlane.xlu0 %1241  ;;  %v1245_v1 = vpop.xlane.xlu1 %1244 }
 0x29e   :  { %v2664_v12 = vrot.slane %v2654_v39, %v5109_v33  ;;  %v2671_v13 = vrot.slane %v2655_v45, %v5109_v33  ;;  %v1595_v24 = vrot.slane %v5164_v59, %v5084_v56  ;;  %v1599_v14 = vrot.slane %v5164_v59, %v5087_v52 }
 0x29f   :  { %v2849_v43 = vcombine.low %v2841_v2, %v2848_v41  ;;  %v2678_v15 = vrot.slane %v2656_v7, %v5109_v33  ;;  %v2685_v16 = vrot.slane %v2657_v6, %v5109_v33  ;;  %v1603_v44 = vrot.slane %v5164_v59, %v5090_v27 }
 0x2a0   :  { %v2686_v19 = vcombine.low %v2664_v12, %v2671_v13  ;;  %v1607_v20 = vrot.slane %v5164_v59, %v5093_v28  ;;  %v1611_v21 = vrot.slane %v5164_v59, %v5096_v29  ;;  %v1615_v10 = vrot.slane %v5164_v59, %v5099_v30 }
 0x2a1   :  { %3956 = vperm.xlu0 %4601, %v2849_v43   ;;  %v2687_v23 = vcombine.low %v2678_v15, %v2685_v16  ;;  %v1619_v55 = vrot.slane %v5164_v59, %v5102_v31  ;;  %v1623_v3 = vrot.slane %v5164_v59, %v5105_v58  ;;  %v2752_v36 = vcombine.low %v1595_v24, %v1599_v14 }
 0x2a2   :  { %v2694_v9 = vrot.slane %v2686_v19, %v5109_v33  ;;  %v2753_v8 = vcombine.low %v1603_v44, %v1607_v20  ;;  %v2754_v0 = vcombine.low %v1611_v21, %v1615_v10  ;;  %v5354_v47 = vadd.f32 %v5081_v26, %v1236_v17 }
 0x2a3   :  { %v2701_v4 = vrot.slane %v2687_v23, %v5109_v33  ;;  %v2755_v48 = vcombine.low %v1619_v55, %v1623_v3  ;;  %v2762_v50 = vrot.slane %v2752_v36, %v5109_v33  ;;  %v5359_v51 = vadd.f32 %v5081_v26, %v1239_v18 }
 0x2a4   :  { %v2769_v46 = vrot.slane %v2753_v8, %v5109_v33  ;;  %v2776_v59 = vrot.slane %v2754_v0, %v5109_v33  ;;  %v1691_v53 = vrot.slane %v5203_v32, %v5084_v56  ;;  %v1695_v57 = vrot.slane %v5203_v32, %v5087_v52 }
 0x2a5   :  { %v2702_v60 = vcombine.low %v2694_v9, %v2701_v4  ;;  %v2783_v61 = vrot.slane %v2755_v48, %v5109_v33  ;;  %v1699_v62 = vrot.slane %v5203_v32, %v5090_v27  ;;  %v1703_v38 = vrot.slane %v5203_v32, %v5093_v28 }
 0x2a6   :  { %v2784_v2 = vcombine.low %v2762_v50, %v2769_v46  ;;  %v1707_v39 = vrot.slane %v5203_v32, %v5096_v29  ;;  %v1711_v45 = vrot.slane %v5203_v32, %v5099_v30  ;;  %v1715_v41 = vrot.slane %v5203_v32, %v5102_v31 }
 0x2a7   :  { %3947 = vperm.xlu1 %4600, %v2702_v60   ;;  %v2785_v7 = vcombine.low %v2776_v59, %v2783_v61  ;;  %v1719_v6 = vrot.slane %v5203_v32, %v5105_v58  ;;  %v2899_v12 = vcombine.low %v1691_v53, %v1695_v57  ;;  %v2900_v13 = vcombine.low %v1699_v62, %v1703_v38 }
 0x2a8   :  { %v2792_v24 = vrot.slane %v2784_v2, %v5109_v33  ;;  %v2901_v14 = vcombine.low %v1707_v39, %v1711_v45  ;;  %v5382_v43 = vadd.f32 %v5081_v26, %v1242_v63  ;;  %v5385_v15 = vadd.f32 %v5081_v26, %v1245_v1  ;;  %v1248_v45 = vpop.xlane.xlu0 %1247 }
 0x2a9   :  { %v2799_v16 = vrot.slane %v2785_v7, %v5109_v33  ;;  %v2902_v44 = vcombine.low %v1715_v41, %v1719_v6  ;;  %v2909_v17 = vrot.slane %v2899_v12, %v5109_v33  ;;  %v2916_v18 = vrot.slane %v2900_v13, %v5109_v33  ;;  %v1251_v41 = vpop.xlane.xlu1 %1250 }
 0x2aa   :  { %v2923_v32 = vrot.slane %v2901_v14, %v5109_v33  ;;  %v1659_v19 = vrot.slane %v5187_v42, %v5084_v56  ;;  %v1663_v20 = vrot.slane %v5187_v42, %v5087_v52  ;;  %v1667_v21 = vrot.slane %v5187_v42, %v5090_v27 }
 0x2ab   :  { %v2800_v10 = vcombine.low %v2792_v24, %v2799_v16  ;;  %v2930_v23 = vrot.slane %v2902_v44, %v5109_v33  ;;  %v2931_v55 = vcombine.low %v2909_v17, %v2916_v18  ;;  %v1671_v3 = vrot.slane %v5187_v42, %v5093_v28 }
 0x2ac   :  { %v1675_v36 = vrot.slane %v5187_v42, %v5096_v29  ;;  %v1679_v9 = vrot.slane %v5187_v42, %v5099_v30  ;;  %v1683_v8 = vrot.slane %v5187_v42, %v5102_v31  ;;  %v1687_v0 = vrot.slane %v5187_v42, %v5105_v58 }
 0x2ad   :  { %3953 = vperm.xlu1 %4600, %v2800_v10   ;;  %v2932_v4 = vcombine.low %v2923_v32, %v2930_v23  ;;  %v2939_v48 = vrot.slane %v2931_v55, %v5109_v33  ;;  %v2850_v50 = vcombine.low %v1659_v19, %v1663_v20  ;;  %v2851_v46 = vcombine.low %v1667_v21, %v1671_v3 }
 0x2ae   :  { %v2852_v59 = vcombine.low %v1675_v36, %v1679_v9  ;;  %v2853_v53 = vcombine.low %v1683_v8, %v1687_v0  ;;  %v1883_v57 = vrot.slane %v5301_v35, %v5084_v56  ;;  %v1887_v60 = vrot.slane %v5301_v35, %v5087_v52 }
 0x2af   :  { %v2946_v61 = vrot.slane %v2932_v4, %v5109_v33  ;;  %v2860_v62 = vrot.slane %v2850_v50, %v5109_v33  ;;  %v2867_v42 = vrot.slane %v2851_v46, %v5109_v33  ;;  %v1891_v38 = vrot.slane %v5301_v35, %v5090_v27 }
 0x2b0   :  { %v2874_v63 = vrot.slane %v2852_v59, %v5109_v33  ;;  %v2881_v1 = vrot.slane %v2853_v53, %v5109_v33  ;;  %v1895_v2 = vrot.slane %v5301_v35, %v5093_v28  ;;  %v1899_v39 = vrot.slane %v5301_v35, %v5096_v29 }
 0x2b1   :  { %v2947_v7 = vcombine.low %v2939_v48, %v2946_v61  ;;  %v2882_v6 = vcombine.low %v2860_v62, %v2867_v42  ;;  %v1903_v12 = vrot.slane %v5301_v35, %v5099_v30  ;;  %v1907_v13 = vrot.slane %v5301_v35, %v5102_v31 }
 0x2b2   :  { %v2883_v24 = vcombine.low %v2874_v63, %v2881_v1  ;;  %v1911_v14 = vrot.slane %v5301_v35, %v5105_v58  ;;  %v3193_v16 = vcombine.low %v1883_v57, %v1887_v60  ;;  %v3194_v44 = vcombine.low %v1891_v38, %v1895_v2 }
 0x2b3   :  { %3962 = vperm.xlu1 %4600, %v2947_v7   ;;  %v2890_v17 = vrot.slane %v2882_v6, %v5109_v33  ;;  %v3195_v18 = vcombine.low %v1899_v39, %v1903_v12  ;;  %v5432_v32 = vadd.f32 %v5081_v26, %v1248_v45  ;;  %v5435_v19 = vadd.f32 %v5081_v26, %v1251_v41  ;;  %v1254_v12 = vpop.xlane.xlu0 %1253 }
 0x2b4   :  { %v2897_v20 = vrot.slane %v2883_v24, %v5109_v33  ;;  %v3196_v21 = vcombine.low %v1907_v13, %v1911_v14  ;;  %v3203_v10 = vrot.slane %v3193_v16, %v5109_v33  ;;  %v3210_v23 = vrot.slane %v3194_v44, %v5109_v33  ;;  %v1257_v13 = vpop.xlane.xlu1 %1256 }
 0x2b5   :  { %v3217_v35 = vrot.slane %v3195_v18, %v5109_v33  ;;  %v1755_v55 = vrot.slane %v5223_v54, %v5084_v56  ;;  %v1759_v3 = vrot.slane %v5223_v54, %v5087_v52  ;;  %v1763_v36 = vrot.slane %v5223_v54, %v5090_v27 }
 0x2b6   :  { %v2898_v9 = vcombine.low %v2890_v17, %v2897_v20  ;;  %v3224_v8 = vrot.slane %v3196_v21, %v5109_v33  ;;  %v3225_v0 = vcombine.low %v3203_v10, %v3210_v23  ;;  %v1767_v4 = vrot.slane %v5223_v54, %v5093_v28 }
 0x2b7   :  { %v1771_v48 = vrot.slane %v5223_v54, %v5096_v29  ;;  %v1775_v50 = vrot.slane %v5223_v54, %v5099_v30  ;;  %v1779_v46 = vrot.slane %v5223_v54, %v5102_v31  ;;  %v1783_v59 = vrot.slane %v5223_v54, %v5105_v58 }
 0x2b8   :  { %3959 = vperm.xlu1 %4600, %v2898_v9   ;;  %v3226_v53 = vcombine.low %v3217_v35, %v3224_v8  ;;  %v3233_v57 = vrot.slane %v3225_v0, %v5109_v33  ;;  %v2997_v60 = vcombine.low %v1755_v55, %v1759_v3  ;;  %v2998_v61 = vcombine.low %v1763_v36, %v1767_v4 }
 0x2b9   :  { %v2999_v62 = vcombine.low %v1771_v48, %v1775_v50  ;;  %v3000_v42 = vcombine.low %v1779_v46, %v1783_v59  ;;  %v1947_v38 = vrot.slane %v5330_v11, %v5084_v56  ;;  %v1951_v63 = vrot.slane %v5330_v11, %v5087_v52 }
 0x2ba   :  { %v3240_v1 = vrot.slane %v3226_v53, %v5109_v33  ;;  %v3007_v2 = vrot.slane %v2997_v60, %v5109_v33  ;;  %v3014_v54 = vrot.slane %v2998_v61, %v5109_v33  ;;  %v1955_v39 = vrot.slane %v5330_v11, %v5090_v27 }
 0x2bb   :  { %v3021_v45 = vrot.slane %v2999_v62, %v5109_v33  ;;  %v3028_v41 = vrot.slane %v3000_v42, %v5109_v33  ;;  %v1959_v7 = vrot.slane %v5330_v11, %v5093_v28  ;;  %v1963_v6 = vrot.slane %v5330_v11, %v5096_v29 }
 0x2bc   :  { %v3241_v24 = vcombine.low %v3233_v57, %v3240_v1  ;;  %v3029_v14 = vcombine.low %v3007_v2, %v3014_v54  ;;  %v1967_v16 = vrot.slane %v5330_v11, %v5099_v30  ;;  %v1971_v44 = vrot.slane %v5330_v11, %v5102_v31 }
 0x2bd   :  { %v3030_v17 = vcombine.low %v3021_v45, %v3028_v41  ;;  %v1975_v18 = vrot.slane %v5330_v11, %v5105_v58  ;;  %v3291_v20 = vcombine.low %v1947_v38, %v1951_v63  ;;  %v3292_v21 = vcombine.low %v1955_v39, %v1959_v7 }
 0x2be   :  { %3980 = vperm.xlu0 %4601, %v3241_v24   ;;  %v3037_v10 = vrot.slane %v3029_v14, %v5109_v33  ;;  %v3293_v23 = vcombine.low %v1963_v6, %v1967_v16  ;;  %v5482_v35 = vadd.f32 %v5081_v26, %v1254_v12  ;;  %v5485_v55 = vadd.f32 %v5081_v26, %v1257_v13  ;;  %v1263_v16 = vpop.xlane.xlu1 %1262 }
 0x2bf   :  { %v3044_v3 = vrot.slane %v3030_v17, %v5109_v33  ;;  %v3294_v36 = vcombine.low %v1971_v44, %v1975_v18  ;;  %v3301_v9 = vrot.slane %v3291_v20, %v5109_v33  ;;  %v3308_v8 = vrot.slane %v3292_v21, %v5109_v33 }
 0x2c0   :  { %v3315_v11 = vrot.slane %v3293_v23, %v5109_v33  ;;  %v1723_v0 = vrot.slane %v5207_v37, %v5084_v56  ;;  %v1727_v4 = vrot.slane %v5207_v37, %v5087_v52  ;;  %v1731_v48 = vrot.slane %v5207_v37, %v5090_v27 }
 0x2c1   :  { %v3045_v50 = vcombine.low %v3037_v10, %v3044_v3  ;;  %v3322_v46 = vrot.slane %v3294_v36, %v5109_v33  ;;  %v3323_v59 = vcombine.low %v3301_v9, %v3308_v8  ;;  %v1735_v53 = vrot.slane %v5207_v37, %v5093_v28  ;;  %v1260_v36 = vpop.xlane.xlu0 %1259 }
 0x2c2   :  { %v1739_v57 = vrot.slane %v5207_v37, %v5096_v29  ;;  %v1743_v60 = vrot.slane %v5207_v37, %v5099_v30  ;;  %v1747_v61 = vrot.slane %v5207_v37, %v5102_v31  ;;  %v1751_v62 = vrot.slane %v5207_v37, %v5105_v58 }
 0x2c3   :  { %3968 = vperm.xlu1 %4600, %v3045_v50   ;;  %v3324_v42 = vcombine.low %v3315_v11, %v3322_v46  ;;  %v3331_v38 = vrot.slane %v3323_v59, %v5109_v33  ;;  %v2948_v63 = vcombine.low %v1723_v0, %v1727_v4  ;;  %v2949_v1 = vcombine.low %v1731_v48, %v1735_v53 }
 0x2c4   :  { %v2950_v2 = vcombine.low %v1739_v57, %v1743_v60  ;;  %v2951_v54 = vcombine.low %v1747_v61, %v1751_v62  ;;  %v2011_v39 = vrot.slane %v5359_v51, %v5084_v56  ;;  %v2015_v45 = vrot.slane %v5359_v51, %v5087_v52 }
 0x2c5   :  { %v3338_v41 = vrot.slane %v3324_v42, %v5109_v33  ;;  %v2958_v7 = vrot.slane %v2948_v63, %v5109_v33  ;;  %v2965_v37 = vrot.slane %v2949_v1, %v5109_v33  ;;  %v2019_v6 = vrot.slane %v5359_v51, %v5090_v27 }
 0x2c6   :  { %v2972_v12 = vrot.slane %v2950_v2, %v5109_v33  ;;  %v2979_v13 = vrot.slane %v2951_v54, %v5109_v33  ;;  %v2023_v24 = vrot.slane %v5359_v51, %v5093_v28  ;;  %v2027_v14 = vrot.slane %v5359_v51, %v5096_v29 }
 0x2c7   :  { %v3339_v44 = vcombine.low %v3331_v38, %v3338_v41  ;;  %v2980_v17 = vcombine.low %v2958_v7, %v2965_v37  ;;  %v2031_v18 = vrot.slane %v5359_v51, %v5099_v30  ;;  %v2035_v20 = vrot.slane %v5359_v51, %v5102_v31 }
 0x2c8   :  { %v2981_v21 = vcombine.low %v2972_v12, %v2979_v13  ;;  %v2039_v10 = vrot.slane %v5359_v51, %v5105_v58  ;;  %v3389_v23 = vcombine.low %v2011_v39, %v2015_v45  ;;  %v3390_v3 = vcombine.low %v2019_v6, %v2023_v24 }
 0x2c9   :  { %3986 = vperm.xlu0 %4601, %v3339_v44   ;;  %v2988_v9 = vrot.slane %v2980_v17, %v5109_v33  ;;  %v3391_v8 = vcombine.low %v2027_v14, %v2031_v18  ;;  %v5532_v11 = vadd.f32 %v5081_v26, %v1260_v36  ;;  %v5535_v0 = vadd.f32 %v5081_v26, %v1263_v16 }
 0x2ca   :  { %v2995_v4 = vrot.slane %v2981_v21, %v5109_v33  ;;  %v3392_v48 = vcombine.low %v2035_v20, %v2039_v10  ;;  %v3399_v50 = vrot.slane %v3389_v23, %v5109_v33  ;;  %v3406_v51 = vrot.slane %v3390_v3, %v5109_v33  ;;  %v1266_v20 = vpop.xlane.xlu0 %1265  ;;  %v1269_v21 = vpop.xlane.xlu1 %1268 }
 0x2cb   :  { %v3413_v46 = vrot.slane %v3391_v8, %v5109_v33  ;;  %v2075_v59 = vrot.slane %v5385_v15, %v5084_v56  ;;  %v2079_v53 = vrot.slane %v5385_v15, %v5087_v52  ;;  %v2083_v57 = vrot.slane %v5385_v15, %v5090_v27 }
 0x2cc   :  { %v2996_v60 = vcombine.low %v2988_v9, %v2995_v4  ;;  %v3420_v61 = vrot.slane %v3392_v48, %v5109_v33  ;;  %v3421_v62 = vcombine.low %v3399_v50, %v3406_v51  ;;  %v2087_v42 = vrot.slane %v5385_v15, %v5093_v28 }
 0x2cd   :  { %v2091_v38 = vrot.slane %v5385_v15, %v5096_v29  ;;  %v2095_v63 = vrot.slane %v5385_v15, %v5099_v30  ;;  %v2099_v1 = vrot.slane %v5385_v15, %v5102_v31  ;;  %v2103_v2 = vrot.slane %v5385_v15, %v5105_v58 }
 0x2ce   :  { %3965 = vperm.xlu1 %4600, %v2996_v60   ;;  %v3422_v54 = vcombine.low %v3413_v46, %v3420_v61  ;;  %v3429_v39 = vrot.slane %v3421_v62, %v5109_v33  ;;  %v3487_v45 = vcombine.low %v2075_v59, %v2079_v53  ;;  %v3488_v41 = vcombine.low %v2083_v57, %v2087_v42 }
 0x2cf   :  { %v3489_v7 = vcombine.low %v2091_v38, %v2095_v63  ;;  %v3490_v37 = vcombine.low %v2099_v1, %v2103_v2  ;;  %v1851_v6 = vrot.slane %v5298_v34, %v5084_v56  ;;  %v1855_v12 = vrot.slane %v5298_v34, %v5087_v52 }
 0x2d0   :  { %v3436_v13 = vrot.slane %v3422_v54, %v5109_v33  ;;  %v3497_v24 = vrot.slane %v3487_v45, %v5109_v33  ;;  %v3504_v15 = vrot.slane %v3488_v41, %v5109_v33  ;;  %v1859_v14 = vrot.slane %v5298_v34, %v5090_v27 }
 0x2d1   :  { %v3511_v16 = vrot.slane %v3489_v7, %v5109_v33  ;;  %v3518_v44 = vrot.slane %v3490_v37, %v5109_v33  ;;  %v1863_v17 = vrot.slane %v5298_v34, %v5093_v28  ;;  %v1867_v18 = vrot.slane %v5298_v34, %v5096_v29 }
 0x2d2   :  { %v3437_v10 = vcombine.low %v3429_v39, %v3436_v13  ;;  %v3519_v23 = vcombine.low %v3497_v24, %v3504_v15  ;;  %v1871_v3 = vrot.slane %v5298_v34, %v5099_v30  ;;  %v1875_v36 = vrot.slane %v5298_v34, %v5102_v31 }
 0x2d3   :  { %v3520_v9 = vcombine.low %v3511_v16, %v3518_v44  ;;  %v1879_v8 = vrot.slane %v5298_v34, %v5105_v58  ;;  %v3144_v4 = vcombine.low %v1851_v6, %v1855_v12  ;;  %v3145_v48 = vcombine.low %v1859_v14, %v1863_v17 }
 0x2d4   :  { %3992 = vperm.xlu0 %4601, %v3437_v10   ;;  %v3527_v50 = vrot.slane %v3519_v23, %v5109_v33  ;;  %v3146_v51 = vcombine.low %v1867_v18, %v1871_v3  ;;  %v5582_v46 = vadd.f32 %v5081_v26, %v1266_v20  ;;  %v5585_v59 = vadd.f32 %v5081_v26, %v1269_v21 }
 0x2d5   :  { %v3534_v53 = vrot.slane %v3520_v9, %v5109_v33  ;;  %v3147_v57 = vcombine.low %v1875_v36, %v1879_v8  ;;  %v3154_v60 = vrot.slane %v3144_v4, %v5109_v33  ;;  %v3161_v61 = vrot.slane %v3145_v48, %v5109_v33 }
 0x2d6   :  { %v3168_v34 = vrot.slane %v3146_v51, %v5109_v33  ;;  %v2139_v62 = vrot.slane %v5435_v19, %v5084_v56  ;;  %v2143_v42 = vrot.slane %v5435_v19, %v5087_v52  ;;  %v2147_v38 = vrot.slane %v5435_v19, %v5090_v27 }
 0x2d7   :  { %v3535_v26 = vcombine.low %v3527_v50, %v3534_v53  ;;  %v3175_v63 = vrot.slane %v3147_v57, %v5109_v33  ;;  %v3176_v1 = vcombine.low %v3154_v60, %v3161_v61  ;;  %v2151_v2 = vrot.slane %v5435_v19, %v5093_v28 }
 0x2d8   :  { %v2155_v54 = vrot.slane %v5435_v19, %v5096_v29  ;;  %v2159_v39 = vrot.slane %v5435_v19, %v5099_v30  ;;  %v2163_v45 = vrot.slane %v5435_v19, %v5102_v31  ;;  %v2167_v41 = vrot.slane %v5435_v19, %v5105_v58 }
 0x2d9   :  { %3998 = vperm.xlu0 %4601, %v3535_v26   ;;  %v3177_v7 = vcombine.low %v3168_v34, %v3175_v63  ;;  %v3184_v37 = vrot.slane %v3176_v1, %v5109_v33  ;;  %v3585_v6 = vcombine.low %v2139_v62, %v2143_v42  ;;  %v3586_v12 = vcombine.low %v2147_v38, %v2151_v2 }
 0x2da   :  { %v3587_v13 = vcombine.low %v2155_v54, %v2159_v39  ;;  %v3588_v24 = vcombine.low %v2163_v45, %v2167_v41  ;;  %v1915_v15 = vrot.slane %v5326_v5, %v5084_v56  ;;  %v1919_v14 = vrot.slane %v5326_v5, %v5087_v52 }
 0x2db   :  { %v3191_v16 = vrot.slane %v3177_v7, %v5109_v33  ;;  %v3595_v44 = vrot.slane %v3585_v6, %v5109_v33  ;;  %v3602_v19 = vrot.slane %v3586_v12, %v5109_v33  ;;  %v1923_v17 = vrot.slane %v5326_v5, %v5090_v27 }
 0x2dc   :  { %v3609_v18 = vrot.slane %v3587_v13, %v5109_v33  ;;  %v3616_v20 = vrot.slane %v3588_v24, %v5109_v33  ;;  %v1927_v21 = vrot.slane %v5326_v5, %v5093_v28  ;;  %v1931_v10 = vrot.slane %v5326_v5, %v5096_v29 }
 0x2dd   :  { %v3192_v23 = vcombine.low %v3184_v37, %v3191_v16  ;;  %v3617_v3 = vcombine.low %v3595_v44, %v3602_v19  ;;  %v1935_v36 = vrot.slane %v5326_v5, %v5099_v30  ;;  %v1939_v9 = vrot.slane %v5326_v5, %v5102_v31 }
 0x2de   :  { %v3618_v8 = vcombine.low %v3609_v18, %v3616_v20  ;;  %v1943_v4 = vrot.slane %v5326_v5, %v5105_v58  ;;  %v3242_v48 = vcombine.low %v1915_v15, %v1919_v14  ;;  %v3243_v50 = vcombine.low %v1923_v17, %v1927_v21 }
 0x2df   :  { %3977 = vperm.xlu1 %4600, %v3192_v23   ;;  %v3625_v51 = vrot.slane %v3617_v3, %v5109_v33  ;;  %v3244_v53 = vcombine.low %v1931_v10, %v1935_v36  ;;  %v2203_v57 = vrot.slane %v5485_v55, %v5084_v56  ;;  %v2207_v60 = vrot.slane %v5485_v55, %v5087_v52 }
 0x2e0   :  { %v3632_v61 = vrot.slane %v3618_v8, %v5109_v33  ;;  %v3245_v34 = vcombine.low %v1939_v9, %v1943_v4  ;;  %v3252_v62 = vrot.slane %v3242_v48, %v5109_v33  ;;  %v3259_v42 = vrot.slane %v3243_v50, %v5109_v33 }
 0x2e1   :  { %v3266_v5 = vrot.slane %v3244_v53, %v5109_v33  ;;  %v2211_v38 = vrot.slane %v5485_v55, %v5090_v27  ;;  %v2215_v26 = vrot.slane %v5485_v55, %v5093_v28  ;;  %v2219_v63 = vrot.slane %v5485_v55, %v5096_v29 }
 0x2e2   :  { %v3633_v1 = vcombine.low %v3625_v51, %v3632_v61  ;;  %v3273_v2 = vrot.slane %v3245_v34, %v5109_v33  ;;  %v3274_v54 = vcombine.low %v3252_v62, %v3259_v42  ;;  %v2223_v39 = vrot.slane %v5485_v55, %v5099_v30 }
 0x2e3   :  { %v2227_v45 = vrot.slane %v5485_v55, %v5102_v31  ;;  %v2231_v41 = vrot.slane %v5485_v55, %v5105_v58  ;;  %v3683_v7 = vcombine.low %v2203_v57, %v2207_v60  ;;  %v3684_v37 = vcombine.low %v2211_v38, %v2215_v26 }
 0x2e4   :  { %4004 = vperm.xlu0 %4601, %v3633_v1   ;;  %v3275_v6 = vcombine.low %v3266_v5, %v3273_v2  ;;  %v3282_v12 = vrot.slane %v3274_v54, %v5109_v33  ;;  %v3685_v13 = vcombine.low %v2219_v63, %v2223_v39  ;;  %v1979_v24 = vrot.slane %v5354_v47, %v5084_v56 }
 0x2e5   :  { %v3686_v15 = vcombine.low %v2227_v45, %v2231_v41  ;;  %v3693_v14 = vrot.slane %v3683_v7, %v5109_v33  ;;  %v3700_v16 = vrot.slane %v3684_v37, %v5109_v33  ;;  %v1983_v44 = vrot.slane %v5354_v47, %v5087_v52 }
 0x2e6   :  { %v3289_v55 = vrot.slane %v3275_v6, %v5109_v33  ;;  %v3707_v19 = vrot.slane %v3685_v13, %v5109_v33  ;;  %v1987_v17 = vrot.slane %v5354_v47, %v5090_v27  ;;  %v1991_v18 = vrot.slane %v5354_v47, %v5093_v28 }
 0x2e7   :  { %v3714_v20 = vrot.slane %v3686_v15, %v5109_v33  ;;  %v3715_v21 = vcombine.low %v3693_v14, %v3700_v16  ;;  %v1995_v10 = vrot.slane %v5354_v47, %v5096_v29  ;;  %v1999_v23 = vrot.slane %v5354_v47, %v5099_v30 }
 0x2e8   :  { %v3290_v3 = vcombine.low %v3282_v12, %v3289_v55  ;;  %v2003_v36 = vrot.slane %v5354_v47, %v5102_v31  ;;  %v2007_v9 = vrot.slane %v5354_v47, %v5105_v58  ;;  %v3340_v8 = vcombine.low %v1979_v24, %v1983_v44 }
 0x2e9   :  { %v3716_v4 = vcombine.low %v3707_v19, %v3714_v20  ;;  %v3723_v48 = vrot.slane %v3715_v21, %v5109_v33  ;;  %v3341_v50 = vcombine.low %v1987_v17, %v1991_v18  ;;  %v3342_v51 = vcombine.low %v1995_v10, %v1999_v23 }
 0x2ea   :  { %3983 = vperm.xlu1 %4600, %v3290_v3   ;;  %v3343_v53 = vcombine.low %v2003_v36, %v2007_v9  ;;  %v3350_v57 = vrot.slane %v3340_v8, %v5109_v33  ;;  %v2043_v60 = vrot.slane %v5382_v43, %v5084_v56  ;;  %v2047_v61 = vrot.slane %v5382_v43, %v5087_v52 }
 0x2eb   :  { %v3730_v34 = vrot.slane %v3716_v4, %v5109_v33  ;;  %v3357_v47 = vrot.slane %v3341_v50, %v5109_v33  ;;  %v3364_v62 = vrot.slane %v3342_v51, %v5109_v33  ;;  %v2051_v42 = vrot.slane %v5382_v43, %v5090_v27 }
 0x2ec   :  { %v3371_v5 = vrot.slane %v3343_v53, %v5109_v33  ;;  %v2055_v38 = vrot.slane %v5382_v43, %v5093_v28  ;;  %v2059_v26 = vrot.slane %v5382_v43, %v5096_v29  ;;  %v2063_v63 = vrot.slane %v5382_v43, %v5099_v30 }
 0x2ed   :  { %v3731_v1 = vcombine.low %v3723_v48, %v3730_v34  ;;  %v3372_v2 = vcombine.low %v3350_v57, %v3357_v47  ;;  %v2067_v54 = vrot.slane %v5382_v43, %v5102_v31  ;;  %v2071_v39 = vrot.slane %v5382_v43, %v5105_v58 }
 0x2ee   :  { %v3373_v45 = vcombine.low %v3364_v62, %v3371_v5  ;;  %v3438_v41 = vcombine.low %v2043_v60, %v2047_v61  ;;  %v3439_v7 = vcombine.low %v2051_v42, %v2055_v38  ;;  %v3440_v37 = vcombine.low %v2059_v26, %v2063_v63 }
 0x2ef   :  { %4010 = vperm.xlu0 %4601, %v3731_v1   ;;  %v3380_v6 = vrot.slane %v3372_v2, %v5109_v33  ;;  %v3441_v12 = vcombine.low %v2067_v54, %v2071_v39  ;;  %v2171_v13 = vrot.slane %v5482_v35, %v5084_v56  ;;  %v2175_v24 = vrot.slane %v5482_v35, %v5087_v52 }
 0x2f0   :  { %v3387_v15 = vrot.slane %v3373_v45, %v5109_v33  ;;  %v3448_v14 = vrot.slane %v3438_v41, %v5109_v33  ;;  %v3455_v43 = vrot.slane %v3439_v7, %v5109_v33  ;;  %v3462_v16 = vrot.slane %v3440_v37, %v5109_v33 }
 0x2f1   :  { %v3469_v44 = vrot.slane %v3441_v12, %v5109_v33  ;;  %v2179_v55 = vrot.slane %v5482_v35, %v5090_v27  ;;  %v2183_v19 = vrot.slane %v5482_v35, %v5093_v28  ;;  %v2187_v17 = vrot.slane %v5482_v35, %v5096_v29 }
 0x2f2   :  { %v3388_v18 = vcombine.low %v3380_v6, %v3387_v15  ;;  %v3470_v20 = vcombine.low %v3448_v14, %v3455_v43  ;;  %v2191_v21 = vrot.slane %v5482_v35, %v5099_v30  ;;  %v2195_v10 = vrot.slane %v5482_v35, %v5102_v31 }
 0x2f3   :  { %v3471_v23 = vcombine.low %v3462_v16, %v3469_v44  ;;  %v2199_v3 = vrot.slane %v5482_v35, %v5105_v58  ;;  %v3634_v36 = vcombine.low %v2171_v13, %v2175_v24  ;;  %v3635_v9 = vcombine.low %v2179_v55, %v2183_v19 }
 0x2f4   :  { %3989 = vperm.xlu1 %4600, %v3388_v18   ;;  %v3478_v8 = vrot.slane %v3470_v20, %v5109_v33  ;;  %v3636_v4 = vcombine.low %v2187_v17, %v2191_v21  ;;  %v2107_v48 = vrot.slane %v5432_v32, %v5084_v56  ;;  %v2111_v50 = vrot.slane %v5432_v32, %v5087_v52 }
 0x2f5   :  { %v3485_v51 = vrot.slane %v3471_v23, %v5109_v33  ;;  %v3637_v53 = vcombine.low %v2195_v10, %v2199_v3  ;;  %v3644_v57 = vrot.slane %v3634_v36, %v5109_v33  ;;  %v3651_v60 = vrot.slane %v3635_v9, %v5109_v33 }
 0x2f6   :  { %v3658_v35 = vrot.slane %v3636_v4, %v5109_v33  ;;  %v2115_v61 = vrot.slane %v5432_v32, %v5090_v27  ;;  %v2119_v34 = vrot.slane %v5432_v32, %v5093_v28  ;;  %v2123_v47 = vrot.slane %v5432_v32, %v5096_v29 }
 0x2f7   :  { %v3486_v62 = vcombine.low %v3478_v8, %v3485_v51  ;;  %v3665_v42 = vrot.slane %v3637_v53, %v5109_v33  ;;  %v3666_v5 = vcombine.low %v3644_v57, %v3651_v60  ;;  %v2127_v38 = vrot.slane %v5432_v32, %v5099_v30 }
 0x2f8   :  { %v2131_v26 = vrot.slane %v5432_v32, %v5102_v31  ;;  %v2135_v63 = vrot.slane %v5432_v32, %v5105_v58  ;;  %v3536_v1 = vcombine.low %v2107_v48, %v2111_v50  ;;  %v3537_v2 = vcombine.low %v2115_v61, %v2119_v34 }
 0x2f9   :  { %3995 = vperm.xlu1 %4600, %v3486_v62   ;;  %v3667_v54 = vcombine.low %v3658_v35, %v3665_v42  ;;  %v3674_v39 = vrot.slane %v3666_v5, %v5109_v33  ;;  %v3538_v45 = vcombine.low %v2123_v47, %v2127_v38  ;;  %v2267_v41 = vrot.slane %v5535_v0, %v5084_v56 }
 0x2fa   :  { %v3539_v7 = vcombine.low %v2131_v26, %v2135_v63  ;;  %v3546_v37 = vrot.slane %v3536_v1, %v5109_v33  ;;  %v3553_v6 = vrot.slane %v3537_v2, %v5109_v33  ;;  %v2271_v12 = vrot.slane %v5535_v0, %v5087_v52 }
 0x2fb   :  { %v3681_v32 = vrot.slane %v3667_v54, %v5109_v33  ;;  %v3560_v13 = vrot.slane %v3538_v45, %v5109_v33  ;;  %v2275_v24 = vrot.slane %v5535_v0, %v5090_v27  ;;  %v2279_v15 = vrot.slane %v5535_v0, %v5093_v28 }
 0x2fc   :  { %v3567_v14 = vrot.slane %v3539_v7, %v5109_v33  ;;  %v3568_v43 = vcombine.low %v3546_v37, %v3553_v6  ;;  %v2283_v16 = vrot.slane %v5535_v0, %v5096_v29  ;;  %v2287_v44 = vrot.slane %v5535_v0, %v5099_v30 }
 0x2fd   :  { %v3682_v55 = vcombine.low %v3674_v39, %v3681_v32  ;;  %v2291_v19 = vrot.slane %v5535_v0, %v5102_v31  ;;  %v2295_v17 = vrot.slane %v5535_v0, %v5105_v58  ;;  %v3781_v18 = vcombine.low %v2267_v41, %v2271_v12 }
 0x2fe   :  { %v3569_v20 = vcombine.low %v3560_v13, %v3567_v14  ;;  %v3576_v21 = vrot.slane %v3568_v43, %v5109_v33  ;;  %v3782_v10 = vcombine.low %v2275_v24, %v2279_v15  ;;  %v3783_v23 = vcombine.low %v2283_v16, %v2287_v44 }
 0x2ff   :  { %4007 = vperm.xlu0 %4601, %v3682_v55   ;;  %v3784_v3 = vcombine.low %v2291_v19, %v2295_v17  ;;  %v3791_v36 = vrot.slane %v3781_v18, %v5109_v33  ;;  %v1787_v9 = vrot.slane %v5228_v40, %v5084_v56  ;;  %v1791_v8 = vrot.slane %v5228_v40, %v5087_v52 }
 0x300   :  { %v3583_v4 = vrot.slane %v3569_v20, %v5109_v33  ;;  %v3798_v0 = vrot.slane %v3782_v10, %v5109_v33  ;;  %v3805_v48 = vrot.slane %v3783_v23, %v5109_v33  ;;  %v1795_v50 = vrot.slane %v5228_v40, %v5090_v27 }
 0x301   :  { %v3812_v51 = vrot.slane %v3784_v3, %v5109_v33  ;;  %v1799_v53 = vrot.slane %v5228_v40, %v5093_v28  ;;  %v1803_v57 = vrot.slane %v5228_v40, %v5096_v29  ;;  %v1807_v60 = vrot.slane %v5228_v40, %v5099_v30 }
 0x302   :  { %v3584_v35 = vcombine.low %v3576_v21, %v3583_v4  ;;  %v3813_v61 = vcombine.low %v3791_v36, %v3798_v0  ;;  %v1811_v34 = vrot.slane %v5228_v40, %v5102_v31  ;;  %v1815_v47 = vrot.slane %v5228_v40, %v5105_v58 }
 0x303   :  { %v3814_v62 = vcombine.low %v3805_v48, %v3812_v51  ;;  %v3046_v42 = vcombine.low %v1787_v9, %v1791_v8  ;;  %v3047_v5 = vcombine.low %v1795_v50, %v1799_v53  ;;  %v3048_v38 = vcombine.low %v1803_v57, %v1807_v60 }
 0x304   :  { %4001 = vperm.xlu1 %4600, %v3584_v35   ;;  %v3821_v26 = vrot.slane %v3813_v61, %v5109_v33  ;;  %v3049_v63 = vcombine.low %v1811_v34, %v1815_v47  ;;  %v2235_v1 = vrot.slane %v5532_v11, %v5084_v56  ;;  %v2239_v2 = vrot.slane %v5532_v11, %v5087_v52 }
 0x305   :  { %v3828_v54 = vrot.slane %v3814_v62, %v5109_v33  ;;  %v3056_v39 = vrot.slane %v3046_v42, %v5109_v33  ;;  %v3063_v40 = vrot.slane %v3047_v5, %v5109_v33  ;;  %v3070_v45 = vrot.slane %v3048_v38, %v5109_v33 }
 0x306   :  { %v3077_v41 = vrot.slane %v3049_v63, %v5109_v33  ;;  %v2243_v7 = vrot.slane %v5532_v11, %v5090_v27  ;;  %v2247_v37 = vrot.slane %v5532_v11, %v5093_v28  ;;  %v2251_v6 = vrot.slane %v5532_v11, %v5096_v29 }
 0x307   :  { %v3829_v12 = vcombine.low %v3821_v26, %v3828_v54  ;;  %v3078_v32 = vcombine.low %v3056_v39, %v3063_v40  ;;  %v2255_v13 = vrot.slane %v5532_v11, %v5099_v30  ;;  %v2259_v24 = vrot.slane %v5532_v11, %v5102_v31 }
 0x308   :  { %v3079_v15 = vcombine.low %v3070_v45, %v3077_v41  ;;  %v2263_v14 = vrot.slane %v5532_v11, %v5105_v58  ;;  %v3732_v43 = vcombine.low %v2235_v1, %v2239_v2  ;;  %v3733_v16 = vcombine.low %v2243_v7, %v2247_v37 }
 0x309   :  { %4016 = vperm.xlu0 %4601, %v3829_v12   ;;  %v3086_v44 = vrot.slane %v3078_v32, %v5109_v33  ;;  %v3734_v55 = vcombine.low %v2251_v6, %v2255_v13  ;;  %v1819_v19 = vrot.slane %v5251_v49, %v5084_v56  ;;  %v1823_v17 = vrot.slane %v5251_v49, %v5087_v52 }
 0x30a   :  { %v3093_v18 = vrot.slane %v3079_v15, %v5109_v33  ;;  %v3735_v20 = vcombine.low %v2259_v24, %v2263_v14  ;;  %v3742_v21 = vrot.slane %v3732_v43, %v5109_v33  ;;  %v3749_v10 = vrot.slane %v3733_v16, %v5109_v33 }
 0x30b   :  { %v3756_v11 = vrot.slane %v3734_v55, %v5109_v33  ;;  %v1827_v23 = vrot.slane %v5251_v49, %v5090_v27  ;;  %v1831_v3 = vrot.slane %v5251_v49, %v5093_v28  ;;  %v1835_v36 = vrot.slane %v5251_v49, %v5096_v29 }
 0x30c   :  { %v3094_v9 = vcombine.low %v3086_v44, %v3093_v18  ;;  %v3763_v8 = vrot.slane %v3735_v20, %v5109_v33  ;;  %v3764_v4 = vcombine.low %v3742_v21, %v3749_v10  ;;  %v1839_v0 = vrot.slane %v5251_v49, %v5099_v30 }
 0x30d   :  { %v1843_v48 = vrot.slane %v5251_v49, %v5102_v31  ;;  %v1847_v50 = vrot.slane %v5251_v49, %v5105_v58  ;;  %v3095_v51 = vcombine.low %v1819_v19, %v1823_v17  ;;  %v3096_v53 = vcombine.low %v1827_v23, %v1831_v3 }
 0x30e   :  { %3971 = vperm.xlu1 %4600, %v3094_v9   ;;  %v3765_v57 = vcombine.low %v3756_v11, %v3763_v8  ;;  %v3772_v60 = vrot.slane %v3764_v4, %v5109_v33  ;;  %v3097_v35 = vcombine.low %v1835_v36, %v1839_v0  ;;  %v2299_v61 = vrot.slane %v5582_v46, %v5084_v56 }
 0x30f   :  { %v3098_v34 = vcombine.low %v1843_v48, %v1847_v50  ;;  %v3105_v47 = vrot.slane %v3095_v51, %v5109_v33  ;;  %v3112_v62 = vrot.slane %v3096_v53, %v5109_v33  ;;  %v2303_v42 = vrot.slane %v5582_v46, %v5087_v52  ;;  %v3933_v48 = vpop.permute.xlu1 %3932 }
 0x310   :  { %v3779_v49 = vrot.slane %v3765_v57, %v5109_v33  ;;  %v3119_v5 = vrot.slane %v3097_v35, %v5109_v33  ;;  %v2307_v38 = vrot.slane %v5582_v46, %v5090_v27  ;;  %v2311_v26 = vrot.slane %v5582_v46, %v5093_v28 }
 0x311   :  { %v3126_v63 = vrot.slane %v3098_v34, %v5109_v33  ;;  %v3127_v1 = vcombine.low %v3105_v47, %v3112_v62  ;;  %v2315_v2 = vrot.slane %v5582_v46, %v5096_v29  ;;  %v2319_v54 = vrot.slane %v5582_v46, %v5099_v30  ;;  %v3930_v47 = vpop.permute.xlu0 %3929 }
 0x312   :  { %v3780_v39 = vcombine.low %v3772_v60, %v3779_v49  ;;  %v2323_v40 = vrot.slane %v5582_v46, %v5102_v31  ;;  %v2327_v45 = vrot.slane %v5582_v46, %v5105_v58  ;;  %v3830_v41 = vcombine.low %v2299_v61, %v2303_v42 }
 0x313   :  { %v3128_v7 = vcombine.low %v3119_v5, %v3126_v63  ;;  %v3135_v37 = vrot.slane %v3127_v1, %v5109_v33  ;;  %v3831_v6 = vcombine.low %v2307_v38, %v2311_v26  ;;  %v3832_v12 = vcombine.low %v2315_v2, %v2319_v54  ;;  %v5880_v50 = vpop.permute.xlu1 %3938 }
 0x314   :  { %4013 = vperm.xlu0 %4601, %v3780_v39   ;;  %v3833_v32 = vcombine.low %v2323_v40, %v2327_v45  ;;  %v3840_v13 = vrot.slane %v3830_v41, %v5109_v33  ;;  %v2331_v24 = vrot.slane %v5585_v59, %v5084_v56  ;;  %v2335_v15 = vrot.slane %v5585_v59, %v5087_v52 }
 0x315   :  { %v3142_v14 = vrot.slane %v3128_v7, %v5109_v33  ;;  %v3847_v46 = vrot.slane %v3831_v6, %v5109_v33  ;;  %v3854_v43 = vrot.slane %v3832_v12, %v5109_v33  ;;  %v2339_v16 = vrot.slane %v5585_v59, %v5090_v27 }
 0x316   :  { %v3861_v44 = vrot.slane %v3833_v32, %v5109_v33  ;;  %v2343_v55 = vrot.slane %v5585_v59, %v5093_v28  ;;  %v2347_v56 = vrot.slane %v5585_v59, %v5096_v29  ;;  %v2351_v52 = vrot.slane %v5585_v59, %v5099_v30 }
 0x317   :  { %v3143_v19 = vcombine.low %v3135_v37, %v3142_v14  ;;  %v3862_v17 = vcombine.low %v3840_v13, %v3847_v46  ;;  %v2355_v18 = vrot.slane %v5585_v59, %v5102_v31  ;;  %v2359_v20 = vrot.slane %v5585_v59, %v5105_v58  ;;  %v3936_v51 = vpop.permute.xlu1 %3935 }
 0x318   :  { %v3863_v27 = vcombine.low %v3854_v43, %v3861_v44  ;;  %v3879_v21 = vcombine.low %v2331_v24, %v2335_v15  ;;  %v3880_v10 = vcombine.low %v2339_v16, %v2343_v55  ;;  %v3881_v11 = vcombine.low %v2347_v56, %v2351_v52 }
 0x319   :  { %3974 = vperm.xlu1 %4600, %v3143_v19   ;;  %v3870_v28 = vrot.slane %v3862_v17, %v5109_v33  ;;  %v3882_v23 = vcombine.low %v2355_v18, %v2359_v20  ;;  %v5905_v54 = vand.u32 127, %v1336_v22 }
 0x31a   :  { %v3877_v29 = vrot.slane %v3863_v27, %v5109_v33  ;;  %v3889_v30 = vrot.slane %v3879_v21, %v5109_v33  ;;  %v3896_v3 = vrot.slane %v3880_v10, %v5109_v33  ;;  %v3903_v36 = vrot.slane %v3881_v11, %v5109_v33 }
 0x31b   :  { %v3910_v31 = vrot.slane %v3882_v23, %v5109_v33  ;;  %v5882_v53 = vpop.permute.xlu1 %3944  ;;  %v4037_v40 = vadd.s32 4294967280, %v5905_v54  ;;  %v4030_v45 = vadd.s32 4294967288, %v5905_v54  ;;  %v4028_v7 = vsub.s32 %v5905_v54, %v5076_v25 }
 0x31c   :  { %v3878_v9 = vcombine.low %v3870_v28, %v3877_v29  ;;  %v3911_v58 = vcombine.low %v3889_v30, %v3896_v3  ;;  %v4051_v12 = vadd.s32 4294967264, %v5905_v54  ;;  %v4044_v13 = vadd.s32 4294967272, %v5905_v54 }
 0x31d   :  { %v3912_v59 = vcombine.low %v3903_v36, %v3910_v31  ;;  %v4040_v6 = vsub.s32 %v4037_v40, %v5076_v25  ;;  %v4033_v32 = vsub.s32 %v4030_v45, %v5076_v25  ;;  %v4058_v14 = vadd.s32 4294967256, %v5905_v54 }
 0x31e   :  { %4019 = vperm.xlu0 %4601, %v3878_v9   ;;  %v3919_v8 = vrot.slane %v3911_v58, %v5109_v33  ;;  %v4029_v16 = vrot.slane %v3930_v47, %v4028_v7  ;;  %v4054_v44 = vsub.s32 %v4051_v12, %v5076_v25  ;;  %v4065_v55 = vadd.s32 4294967248, %v5905_v54 }
 0x31f   :  { %v3926_v4 = vrot.slane %v3912_v59, %v5109_v33  ;;  %v5884_v57 = vpop.permute.xlu1 %3941  ;;  %v4047_v56 = vsub.s32 %v4044_v13, %v5076_v25  ;;  %v4041_v52 = vrot.slane %v3936_v51, %v4040_v6  ;;  %v4034_v18 = vrot.slane %v3933_v48, %v4033_v32 }
 0x320   :  { %v5894_v62 = vpop.permute.xlu0 %3956  ;;  %v4061_v21 = vsub.s32 %v4058_v14, %v5076_v25  ;;  %v4068_v28 = vsub.s32 %v4065_v55, %v5076_v25  ;;  %v4079_v23 = vadd.s32 4294967232, %v5905_v54  ;;  %v4055_v30 = vrot.slane %v5884_v57, %v4054_v44 }
 0x321   :  { %v3927_v0 = vcombine.low %v3919_v8, %v3926_v4  ;;  %v4036_v11 = vsel %vm4035_vm5, %v4034_v18, %v4029_v16  ;;  %v4072_v3 = vadd.s32 4294967240, %v5905_v54  ;;  %v4048_v9 = vrot.slane %v5880_v50, %v4047_v56 }
 0x322   :  { %v4043_v29 = vsel %vm4042_vm6, %v4041_v52, %v4036_v11  ;;  %v4086_v48 = vadd.s32 4294967224, %v5905_v54  ;;  %v4082_v51 = vsub.s32 %v4079_v23, %v5076_v25 }
 0x323   :  { %4022 = vperm.xlu0 %4601, %v3927_v0   ;;  %v5886_v60 = vpop.permute.xlu1 %3950  ;;  %v4050_v0 = vsel %vm4049_vm7, %v4048_v9, %v4043_v29  ;;  %v4075_v47 = vsub.s32 %v4072_v3, %v5076_v25 }
 0x324   :  { %v4057_v57 = vsel %vm4056_vm8, %v4055_v30, %v4050_v0 }
 0x327   :  { %v5888_v35 = vpop.permute.xlu1 %3947 }
 0x328   :  { %v4069_v50 = vrot.slane %v5888_v35, %v4068_v28 }
 0x32c   :  { %v5890_v61 = vpop.permute.xlu1 %3953 }
 0x32d   :  { %v4083_v35 = vrot.slane %v5890_v61, %v4082_v51 }
 0x332   :  { %v5892_v34 = vpop.permute.xlu1 %3962 }
 0x337   :  { %v5896_v42 = vpop.permute.xlu1 %3959 }
 0x33d   :  { %v3981_v49 = vpop.permute.xlu0 %3980 }
 0x33e   :  { %v4142_v46 = vrot.slane %v3981_v49, %v4033_v32 }
 0x342   :  { %v5898_v5 = vpop.permute.xlu1 %3968 }
 0x348   :  { %v3987_v38 = vpop.permute.xlu0 %3986 }
 0x349   :  { %v4152_v10 = vrot.slane %v3987_v38, %v4047_v56  ;;  %v4093_v38 = vadd.s32 4294967216, %v5905_v54 }
 0x34b   :  { %v4096_v13 = vsub.s32 %v4093_v38, %v5076_v25 }
 0x34d   :  { %v5900_v26 = vpop.permute.xlu1 %3965  ;;  %v4097_v56 = vrot.slane %v5896_v42, %v4096_v13 }
 0x353   :  { %v3993_v63 = vpop.permute.xlu0 %3992 }
 0x354   :  { %v4162_v8 = vrot.slane %v3993_v63, %v4061_v21 }
 0x358   :  { %v5902_v2 = vpop.permute.xlu0 %3998 }
 0x359   :  { %v4172_v40 = vrot.slane %v5902_v2, %v4075_v47  ;;  %v4100_v2 = vadd.s32 4294967208, %v5905_v54 }
 0x35e   :  { %v3978_v1 = vpop.permute.xlu1 %3977 }
 0x35f   :  { %v4138_v24 = vrot.slane %v3978_v1, %v4028_v7  ;;  %v4089_v7 = vsub.s32 %v4086_v48, %v5076_v25 }
 0x361   :  { %v4143_v19 = vsel %vm4035_vm5, %v4142_v46, %v4138_v24  ;;  %v4090_v14 = vrot.slane %v5894_v62, %v4089_v7  ;;  %v4128_v62 = vadd.s32 4294967176, %v5905_v54 }
 0x363   :  { %v5909_v41 = vpop.permute.xlu0 %4004 }
 0x369   :  { %v3984_v39 = vpop.permute.xlu1 %3983 }
 0x36a   :  { %v4147_v15 = vrot.slane %v3984_v39, %v4040_v6  ;;  %v4062_v39 = vrot.slane %v5882_v53, %v4061_v21  ;;  %v4107_v6 = vadd.s32 4294967200, %v5905_v54  ;;  %v4076_v53 = vrot.slane %v5886_v60, %v4075_v47 }
 0x36b   :  { %v4121_v60 = vadd.s32 4294967184, %v5905_v54 }
 0x36c   :  { %v4148_v20 = vsel %vm4042_vm6, %v4147_v15, %v4143_v19  ;;  %v4182_v15 = vrot.slane %v5909_v41, %v4089_v7  ;;  %v4110_v16 = vsub.s32 %v4107_v6, %v5076_v25  ;;  %v4114_v41 = vadd.s32 4294967192, %v5905_v54 }
 0x36d   :  { %v4153_v36 = vsel %vm4049_vm7, %v4152_v10, %v4148_v20  ;;  %v4124_v10 = vsub.s32 %v4121_v60, %v5076_v25  ;;  %v4131_v54 = vsub.s32 %v4128_v62, %v5076_v25 }
 0x36e   :  { %v5918_v43 = vpop.permute.xlu0 %4010  ;;  %v4111_v42 = vrot.slane %v5900_v26, %v4110_v16  ;;  %v4117_v23 = vsub.s32 %v4114_v41, %v5076_v25 }
 0x373   :  { %v3990_v37 = vpop.permute.xlu1 %3989 }
 0x374   :  { %v4157_v27 = vrot.slane %v3990_v37, %v4054_v44  ;;  %v4064_v37 = vsel %vm4063_vm9, %v4062_v39, %v4057_v57 }
 0x375   :  { %v4071_v32 = vsel %vm4070_vm10, %v4069_v50, %v4064_v37 }
 0x376   :  { %v4158_v58 = vsel %vm4056_vm8, %v4157_v27, %v4153_v36  ;;  %v4078_v46 = vsel %vm4077_vm11, %v4076_v53, %v4071_v32 }
 0x377   :  { %v4163_v49 = vsel %vm4063_vm9, %v4162_v8, %v4158_v58  ;;  %v4085_v61 = vsel %vm4084_vm12, %v4083_v35, %v4078_v46  ;;  %v4118_v58 = vrot.slane %v5898_v5, %v4117_v23 }
 0x378   :  { %v3996_v17 = vpop.permute.xlu1 %3995  ;;  %v4092_v20 = vsel %vm4091_vm13, %v4090_v14, %v4085_v61 }
 0x379   :  { %v4167_v59 = vrot.slane %v3996_v17, %v4068_v28  ;;  %v4103_v17 = vsub.s32 %v4100_v2, %v5076_v25  ;;  %v4099_v21 = vsel %vm4098_vm14, %v4097_v56, %v4092_v20 }
 0x37b   :  { %v4168_v1 = vsel %vm4070_vm10, %v4167_v59, %v4163_v49  ;;  %v4192_v27 = vrot.slane %v5918_v43, %v4103_v17  ;;  %v4104_v28 = vrot.slane %v5892_v34, %v4103_v17 }
 0x37c   :  { %v4173_v12 = vsel %vm4077_vm11, %v4172_v40, %v4168_v1 }
 0x37d   :  { %v4106_v36 = vsel %vm4105_vm15, %v4104_v28, %v4099_v21 }
 0x37e   :  { %v4008_v31 = vpop.permute.xlu0 %4007 }
 0x37f   :  { %v4187_v52 = vrot.slane %v4008_v31, %v4096_v13  ;;  %v4113_v31 = vsel %vm4112_vm0, %v4111_v42, %v4106_v36 }
 0x383   :  { %v4002_v4 = vpop.permute.xlu1 %4001 }
 0x384   :  { %v4177_v63 = vrot.slane %v4002_v4, %v4082_v51  ;;  %v4120_v4 = vsel %vm4119_vm1, %v4118_v58, %v4113_v31 }
 0x386   :  { %v4178_v24 = vsel %vm4084_vm12, %v4177_v63, %v4173_v12 }
 0x387   :  { %v4183_v44 = vsel %vm4091_vm13, %v4182_v15, %v4178_v24 }
 0x388   :  { %v4017_v45 = vpop.permute.xlu0 %4016  ;;  %v4188_v18 = vsel %vm4098_vm14, %v4187_v52, %v4183_v44 }
 0x389   :  { %v4193_v29 = vsel %vm4105_vm15, %v4192_v27, %v4188_v18  ;;  %v4202_v59 = vrot.slane %v4017_v45, %v4117_v23 }
 0x38d   :  { %v3972_v19 = vpop.permute.xlu1 %3971 }
 0x38e   :  { %v4125_v43 = vrot.slane %v3972_v19, %v4124_v10 }
 0x390   :  { %v4127_v48 = vsel %vm4126_vm2, %v4125_v43, %v4120_v4 }
 0x393   :  { %v4014_v55 = vpop.permute.xlu0 %4013 }
 0x394   :  { %v4197_v11 = vrot.slane %v4014_v55, %v4110_v16 }
 0x396   :  { %v4198_v9 = vsel %vm4112_vm0, %v4197_v11, %v4193_v29 }
 0x397   :  { %v4203_v0 = vsel %vm4119_vm1, %v4202_v59, %v4198_v9 }
 0x398   :  { %v3975_v3 = vpop.permute.xlu1 %3974 }
 0x399   :  { %v4132_v34 = vrot.slane %v3975_v3, %v4131_v54 }
 0x39b   :  { %v4134_v57 = vsel %vm4133_vm3, %v4132_v34, %v4127_v48 }
 0x39d   :  { %v4020_v30 = vpop.permute.xlu0 %4019 }
 0x39e   :  { %v4207_v26 = vrot.slane %v4020_v30, %v4124_v10 }
 0x3a0   :  { %v4208_v51 = vsel %vm4126_vm2, %v4207_v26, %v4203_v0 }
 0x3a2   :  { %v4023_v8 = vpop.permute.xlu0 %4022 }
 0x3a3   :  { %v4212_v25 = vrot.slane %v4023_v8, %v4131_v54 }
 0x3a5   :  { %v4213_v47 = vsel %vm4133_vm3, %v4212_v25, %v4208_v51 }
 0x3a6   :  { %v4214_v49 = vcombine.low %v4134_v57, %v4213_v47 }
 0x3a8   :  { %v4221_v50 = vrot.slane %v4214_v49, %v5109_v33 }
 0x3aa   :  { %v4228_v5 = vrot.slane %v4221_v50, %v5109_v33 }
 0x3ac   :  { %4234 = vst.msk [vmem:[#allocation3] sm:$0x3] %vm4232_vm4, %v4228_v5 }
 0x3ad   :  { %4646 = shalt.err (!%p4643_p4)
}
 0x3ae   :  { %s4647_s1 = scalar_lea.hbm %s5991_s9, 32 }
 0x3af   :  { %p4648_p5 = scmp.ne.s32.totalorder %s5991_s9, %s4647_s1  ;;  %p4651_p6 = scmp.lt.u32.totalorder %s4647_s1, %s5991_s9 }
 0x3b1   :  { %p4653_p7 = pnand %p4651_p6, %p4648_p5 }
 0x3b3   :  { %4656 = shalt.err (!%p4653_p7)
}
 0x3b4   :  { %4244 = dma.vmem_to_hbm [thread:$0]  %s4242_s13, 32, %s5991_s9, [#allocation4]  }
 0x3b5   :  { %4657 = dma.done.wait [#allocation4], 32  }
 0x3b6   :  { %4658 = vsyncadd [#allocation4], 4294967264 }
 0x3b7   :  { %4248 = vsyncpa [#allocation4], 1 }

</bundles_post_ra>
